<compile_context>
chip_gen: v7x
topology: tpu7x:2x2x1
jax: 0.10.0
libtpu: 0.0.40
codegen_flags: <defaults>
</compile_context>

<pallas_src>
import functools
import numpy as np
import jax
import jax.numpy as jnp
from jax import lax
from jax.experimental import pallas as pl
from jax.experimental.pallas import tpu as pltpu

_BN_EPS = 1e-5


# ---------------------------------------------------------------------------
# Pallas kernel: in-kernel im2col + conv GEMM + BN + ReLU + pooled accumulator,
# MLP head + sigmoid on the last reduction step.
# ---------------------------------------------------------------------------
def _head_kernel(inv_hw,
                 x0_ref, x1_ref, x2_ref,      # 3 ky-shifted rows of padded NHWC (bf16)
                 wc_ref, cs_ref, cb_ref,      # conv weight [9*Cin, Cout_p] (bf16) + BN fold (f32)
                 w1_ref, s1_ref, b1_ref,      # Linear(Cout,512) + BN1d fold
                 w2_ref, s2_ref, b2_ref,      # Linear(512,256) + BN1d fold
                 w3_ref, b3_ref,              # Linear(256,1) padded to 128 lanes; b3 in SMEM
                 o_ref, acc_ref):
    r = pl.program_id(1)                      # row index (reduction axis)
    nr = pl.num_programs(1)

    @pl.when(r == 0)
    def _():
        acc_ref[...] = jnp.zeros_like(acc_ref)

    tb, _, wpad, cin = x0_ref.shape
    w = wpad - 2

    # --- in-kernel im2col for this output row: 9 shifted slices -> one GEMM ---
    rows = (x0_ref, x1_ref, x2_ref)
    taps = []
    for ky in range(3):
        xk = rows[ky][...][:, 0, :, :]                     # (TB, W+2, Cin) bf16
        for kx in range(3):
            taps.append(xk[:, kx:kx + w, :])               # (TB, W, Cin)
    patches = jnp.concatenate(taps, axis=-1)               # (TB, W, 9*Cin)
    patches = patches.reshape(tb * w, 9 * cin)

    # Conv2d(Cin, 2*Cin, k=3, s=1, p=1) as GEMM, bf16 x bf16 -> f32
    y = jnp.dot(patches, wc_ref[...], preferred_element_type=jnp.float32)
    # BatchNorm2d (eval, folded) + ReLU, all f32
    y = jnp.maximum(y * cs_ref[...] + cb_ref[...], 0.0)

    # Global-average-pool as a running per-sample column sum (no big reshape+mean)
    acc_ref[...] += y.reshape(tb, w, -1).sum(axis=1)

    @pl.when(r == nr - 1)
    def _():
        pooled = acc_ref[...] * inv_hw                     # AdaptiveAvgPool2d((1,1)) + Flatten
        # Linear(Cout, 512) + BN1d + ReLU
        h1 = jnp.dot(pooled.astype(jnp.bfloat16), w1_ref[...],
                     preferred_element_type=jnp.float32)
        h1 = jnp.maximum(h1 * s1_ref[...] + b1_ref[...], 0.0)
        # Linear(512, 256) + BN1d + ReLU
        h2 = jnp.dot(h1.astype(jnp.bfloat16), w2_ref[...],
                     preferred_element_type=jnp.float32)
        h2 = jnp.maximum(h2 * s2_ref[...] + b2_ref[...], 0.0)
        # Linear(256, 1) (lane-padded to 128) + Sigmoid
        z = jnp.dot(h2.astype(jnp.bfloat16), w3_ref[...],
                    preferred_element_type=jnp.float32) + b3_ref[0, 0]
        o_ref[...] = jax.nn.sigmoid(z).astype(o_ref.dtype)


# ---------------------------------------------------------------------------
# Wrapper glue
# ---------------------------------------------------------------------------
def _round_up(x, m):
    return (x + m - 1) // m * m


def _pad_last(a, target):
    pad = target - a.shape[-1]
    if pad == 0:
        return a
    return jnp.pad(a, [(0, 0)] * (a.ndim - 1) + [(0, pad)])


def _pad_first(a, target):
    pad = target - a.shape[0]
    if pad == 0:
        return a
    return jnp.pad(a, [(0, pad)] + [(0, 0)] * (a.ndim - 1))


def classifier_head_forward(feat_im, feat_lid, H, W, params, *, batch_block=8):
    """feat_im, feat_lid: NCHW backbone feature maps.  H, W are unused
    (matching the PyTorch forward signature, where they are never read)."""
    del H, W
    z = jnp.concatenate([feat_im, feat_lid], axis=1)        # cat on channel dim (NCHW)
    z = jnp.transpose(z, (0, 2, 3, 1))                      # -> NHWC
    n, h, w, cin = z.shape
    tb = batch_block
    assert n % tb == 0, "demo wrapper requires batch divisible by batch_block"

    # Spatially padded NHWC map (the *only* activation tensor in HBM), bf16 operands.
    xpad = jnp.pad(z, ((0, 0), (1, 1), (1, 1), (0, 0))).astype(jnp.bfloat16)

    cout = params['wconv'].shape[-1]
    cout_p = _round_up(cout, 128)                           # lane-dense conv output
    wc = _pad_last(params['wconv'].reshape(9 * cin, cout), cout_p).astype(jnp.bfloat16)
    cs = _pad_last(params['cs'], cout_p)                    # f32 BN fold (pad cols are 0)
    cb = _pad_last(params['cb'], cout_p)
    w1 = _pad_first(params['w1'], cout_p).astype(jnp.bfloat16)
    s1, b1 = params['s1'], params['b1']
    w2 = params['w2'].astype(jnp.bfloat16)
    s2, b2 = params['s2'], params['b2']
    w3 = _pad_last(params['w3'], 128).astype(jnp.bfloat16)  # lane-dense final output
    b3 = params['b3'].reshape(1, 1).astype(jnp.float32)     # SMEM scalar

    def row_spec(ky):
        # Same padded array passed 3x with a per-tap-row shift: the 3x3 window is
        # assembled in-kernel (no im2col materialization in HBM).
        return pl.BlockSpec((tb, 1, w + 2, cin),
                            lambda b, r: (b, r + ky, 0, 0))

    def const_spec(shape):
        nd = len(shape)
        return pl.BlockSpec(shape, lambda b, r, _nd=nd: (0,) * _nd)

    in_specs = [row_spec(0), row_spec(1), row_spec(2),
                const_spec(wc.shape), const_spec(cs.shape), const_spec(cb.shape),
                const_spec(w1.shape), const_spec(s1.shape), const_spec(b1.shape),
                const_spec(w2.shape), const_spec(s2.shape), const_spec(b2.shape),
                const_spec(w3.shape),
                pl.BlockSpec(memory_space=pltpu.MemorySpace.SMEM)]

    kernel = functools.partial(_head_kernel, 1.0 / float(h * w))
    out = pl.pallas_call(
        kernel,
        out_shape=jax.ShapeDtypeStruct((n, 128), jnp.float32),
        grid=(n // tb, h),
        in_specs=in_specs,
        out_specs=pl.BlockSpec((tb, 128), lambda b, r: (b, 0)),
        scratch_shapes=[pltpu.VMEM((tb, cout_p), jnp.float32)],
        compiler_params=pltpu.CompilerParams(
            dimension_semantics=("parallel", "arbitrary"),
            vmem_limit_bytes=32 * 1024 * 1024),
    )(xpad, xpad, xpad, wc, cs, cb, w1, s1, b1, w2, s2, b2, w3, b3)

    return out[:, :1]                                       # drop lane padding -> (N, 1)


# ---------------------------------------------------------------------------
# Deterministic parameter init (shapes implied by 'resnet18_all' branch)
# ---------------------------------------------------------------------------
def _fold_bn(bias, c):
    gamma = jnp.ones((c,), jnp.float32)
    beta = jnp.zeros((c,), jnp.float32)
    mean = jnp.zeros((c,), jnp.float32)
    var = jnp.ones((c,), jnp.float32)
    scale = gamma / jnp.sqrt(var + _BN_EPS)
    shift = beta + (bias - mean) * scale
    return scale.reshape(1, c), shift.reshape(1, c)


def init_params(key, c_im, c_lid):
    cin = c_im + c_lid            # input_channel
    cout = cin * 2                # first_channel
    ks = jax.random.split(key, 8)
    wconv = jax.random.normal(ks[0], (3, 3, cin, cout), jnp.float32) * 0.1  # HWIO
    bconv = jax.random.normal(ks[1], (cout,), jnp.float32) * 0.1
    cs, cb = _fold_bn(bconv, cout)
    w1 = jax.random.normal(ks[2], (cout, 512), jnp.float32) * 0.1
    s1, b1 = _fold_bn(jax.random.normal(ks[3], (512,), jnp.float32) * 0.1, 512)
    w2 = jax.random.normal(ks[4], (512, 256), jnp.float32) * 0.1
    s2, b2 = _fold_bn(jax.random.normal(ks[5], (256,), jnp.float32) * 0.1, 256)
    w3 = jax.random.normal(ks[6], (256, 1), jnp.float32) * 0.1
    b3 = (jax.random.normal(ks[7], (1,), jnp.float32) * 0.1).reshape(1, 1)
    return dict(wconv=wconv, cs=cs, cb=cb, w1=w1, s1=s1, b1=b1,
                w2=w2, s2=s2, b2=b2, w3=w3, b3=b3)


# ---------------------------------------------------------------------------
# Pure-JAX reference (mirrors the kernel's bf16-operand / f32-accumulate math)
# ---------------------------------------------------------------------------
def reference_forward(feat_im, feat_lid, p):
    z = jnp.concatenate([feat_im, feat_lid], axis=1)
    z = jnp.transpose(z, (0, 2, 3, 1)).astype(jnp.bfloat16)
    y = lax.conv_general_dilated(z, p['wconv'].astype(jnp.bfloat16),
                                 window_strides=(1, 1), padding='SAME',
                                 dimension_numbers=('NHWC', 'HWIO', 'NHWC'),
                                 preferred_element_type=jnp.float32)
    y = jnp.maximum(y * p['cs'].reshape(1, 1, 1, -1) + p['cb'].reshape(1, 1, 1, -1), 0.0)
    pooled = jnp.mean(y, axis=(1, 2))
    h = jnp.dot(pooled.astype(jnp.bfloat16), p['w1'].astype(jnp.bfloat16),
                preferred_element_type=jnp.float32)
    h = jnp.maximum(h * p['s1'] + p['b1'], 0.0)
    h = jnp.dot(h.astype(jnp.bfloat16), p['w2'].astype(jnp.bfloat16),
                preferred_element_type=jnp.float32)
    h = jnp.maximum(h * p['s2'] + p['b2'], 0.0)
    logit = jnp.dot(h.astype(jnp.bfloat16), p['w3'].astype(jnp.bfloat16),
                    preferred_element_type=jnp.float32) + p['b3']
    return jax.nn.sigmoid(logit)


if __name__ == "__main__":
    key = jax.random.PRNGKey(0)
    k_im, k_lid, k_par = jax.random.split(key, 3)

    # Small stand-ins for the frozen backbone outputs (model_im(image), model_lid(lidar)).
    N, C_IM, C_LID, H, W = 16, 64, 64, 8, 8
    feat_im = jax.random.normal(k_im, (N, C_IM, H, W), jnp.float32)
    feat_lid = jax.random.normal(k_lid, (N, C_LID, H, W), jnp.float32)

    params = init_params(k_par, C_IM, C_LID)

    out = classifier_head_forward(feat_im, feat_lid, H, W, params, batch_block=8)
    out = jax.block_until_ready(out)

    ref = reference_forward(feat_im, feat_lid, params)
    np.testing.assert_allclose(np.asarray(out), np.asarray(ref), rtol=3e-3, atol=3e-3)
    assert out.shape == (N, 1)
    print("KERNEL_OK")
</pallas_src>

<mosaic_0001>
module attributes {stable_mosaic.version = 11 : i64} {
  func.func @_head_kernel(%arg0: i32, %arg1: i32, %arg2: memref<8x1x10x128xbf16, #tpu.memory_space<vmem>>, %arg3: memref<8x1x10x128xbf16, #tpu.memory_space<vmem>>, %arg4: memref<8x1x10x128xbf16, #tpu.memory_space<vmem>>, %arg5: memref<1152x256xbf16, #tpu.memory_space<vmem>>, %arg6: memref<1x256xf32, #tpu.memory_space<vmem>>, %arg7: memref<1x256xf32, #tpu.memory_space<vmem>>, %arg8: memref<256x512xbf16, #tpu.memory_space<vmem>>, %arg9: memref<1x512xf32, #tpu.memory_space<vmem>>, %arg10: memref<1x512xf32, #tpu.memory_space<vmem>>, %arg11: memref<512x256xbf16, #tpu.memory_space<vmem>>, %arg12: memref<1x256xf32, #tpu.memory_space<vmem>>, %arg13: memref<1x256xf32, #tpu.memory_space<vmem>>, %arg14: memref<256x128xbf16, #tpu.memory_space<vmem>>, %arg15: memref<1x1xf32, #tpu.memory_space<smem>>, %arg16: memref<8x128xf32, #tpu.memory_space<vmem>>, %arg17: memref<8x256xf32, #tpu.memory_space<vmem>>) attributes {dimension_semantics = [#tpu.dimension_semantics<parallel>, #tpu.dimension_semantics<arbitrary>], iteration_bounds = array<i64: 2, 8>, scalar_prefetch = 0 : i64, scratch_operands = 1 : i64, tpu.core_type = #tpu.core_type<tc>, window_params = [{transform_indices = @transform_0, window_bounds = array<i64: 8, 1, 10, 128>}, {transform_indices = @transform_1, window_bounds = array<i64: 8, 1, 10, 128>}, {transform_indices = @transform_2, window_bounds = array<i64: 8, 1, 10, 128>}, {pipeline_mode = #tpu.pipeline_mode<synchronous>, transform_indices = @transform_3, window_bounds = array<i64: 1152, 256>}, {pipeline_mode = #tpu.pipeline_mode<synchronous>, transform_indices = @transform_4, window_bounds = array<i64: 1, 256>}, {pipeline_mode = #tpu.pipeline_mode<synchronous>, transform_indices = @transform_5, window_bounds = array<i64: 1, 256>}, {pipeline_mode = #tpu.pipeline_mode<synchronous>, transform_indices = @transform_6, window_bounds = array<i64: 256, 512>}, {pipeline_mode = #tpu.pipeline_mode<synchronous>, transform_indices = @transform_7, window_bounds = array<i64: 1, 512>}, {pipeline_mode = #tpu.pipeline_mode<synchronous>, transform_indices = @transform_8, window_bounds = array<i64: 1, 512>}, {pipeline_mode = #tpu.pipeline_mode<synchronous>, transform_indices = @transform_9, window_bounds = array<i64: 512, 256>}, {pipeline_mode = #tpu.pipeline_mode<synchronous>, transform_indices = @transform_10, window_bounds = array<i64: 1, 256>}, {pipeline_mode = #tpu.pipeline_mode<synchronous>, transform_indices = @transform_11, window_bounds = array<i64: 1, 256>}, {pipeline_mode = #tpu.pipeline_mode<synchronous>, transform_indices = @transform_12, window_bounds = array<i64: 256, 128>}, {transform_indices = @transform_13, window_bounds = array<i64: 1, 1>}, {transform_indices = @transform_14, window_bounds = array<i64: 8, 128>}]} {
    %c0_i32 = arith.constant 0 : i32
    %0 = arith.cmpi eq, %arg1, %c0_i32 : i32
    %1 = arith.extui %0 : i1 to i32
    %c0_i32_0 = arith.constant 0 : i32
    %2 = arith.cmpi ne, %1, %c0_i32_0 : i32
    scf.if %2 {
      %cst_25 = arith.constant 0.000000e+00 : f32
      %38 = vector.broadcast %cst_25 : f32 to vector<8x256xf32>
      %c0_26 = arith.constant 0 : index
      %c0_27 = arith.constant 0 : index
      %39 = vector.load %arg17[%c0_26, %c0_27] : memref<8x256xf32, #tpu.memory_space<vmem>>, vector<8x256xf32>
      tpu.vector_store %arg17[%c0_26, %c0_27], %38 {strides = array<i32>} : memref<8x256xf32, #tpu.memory_space<vmem>>, vector<8x256xf32>,
    } else {
    }
    %c0 = arith.constant 0 : index
    %c0_1 = arith.constant 0 : index
    %c0_2 = arith.constant 0 : index
    %c0_3 = arith.constant 0 : index
    %3 = vector.load %arg2[%c0, %c0_1, %c0_2, %c0_3] : memref<8x1x10x128xbf16, #tpu.memory_space<vmem>>, vector<8x1x10x128xbf16>
    %4 = vector.shape_cast %3 : vector<8x1x10x128xbf16> to vector<8x10x128xbf16>
    %5 = vector.extract_strided_slice %4 {offsets = [0, 0, 0], sizes = [8, 8, 128], strides = [1, 1, 1]} : vector<8x10x128xbf16> to vector<8x8x128xbf16>
    %6 = vector.extract_strided_slice %4 {offsets = [0, 1, 0], sizes = [8, 8, 128], strides = [1, 1, 1]} : vector<8x10x128xbf16> to vector<8x8x128xbf16>
    %7 = vector.extract_strided_slice %4 {offsets = [0, 2, 0], sizes = [8, 8, 128], strides = [1, 1, 1]} : vector<8x10x128xbf16> to vector<8x8x128xbf16>
    %c0_4 = arith.constant 0 : index
    %c0_5 = arith.constant 0 : index
    %c0_6 = arith.constant 0 : index
    %c0_7 = arith.constant 0 : index
    %8 = vector.load %arg3[%c0_4, %c0_5, %c0_6, %c0_7] : memref<8x1x10x128xbf16, #tpu.memory_space<vmem>>, vector<8x1x10x128xbf16>
    %9 = vector.shape_cast %8 : vector<8x1x10x128xbf16> to vector<8x10x128xbf16>
    %10 = vector.extract_strided_slice %9 {offsets = [0, 0, 0], sizes = [8, 8, 128], strides = [1, 1, 1]} : vector<8x10x128xbf16> to vector<8x8x128xbf16>
    %11 = vector.extract_strided_slice %9 {offsets = [0, 1, 0], sizes = [8, 8, 128], strides = [1, 1, 1]} : vector<8x10x128xbf16> to vector<8x8x128xbf16>
    %12 = vector.extract_strided_slice %9 {offsets = [0, 2, 0], sizes = [8, 8, 128], strides = [1, 1, 1]} : vector<8x10x128xbf16> to vector<8x8x128xbf16>
    %c0_8 = arith.constant 0 : index
    %c0_9 = arith.constant 0 : index
    %c0_10 = arith.constant 0 : index
    %c0_11 = arith.constant 0 : index
    %13 = vector.load %arg4[%c0_8, %c0_9, %c0_10, %c0_11] : memref<8x1x10x128xbf16, #tpu.memory_space<vmem>>, vector<8x1x10x128xbf16>
    %14 = vector.shape_cast %13 : vector<8x1x10x128xbf16> to vector<8x10x128xbf16>
    %15 = vector.extract_strided_slice %14 {offsets = [0, 0, 0], sizes = [8, 8, 128], strides = [1, 1, 1]} : vector<8x10x128xbf16> to vector<8x8x128xbf16>
    %16 = vector.extract_strided_slice %14 {offsets = [0, 1, 0], sizes = [8, 8, 128], strides = [1, 1, 1]} : vector<8x10x128xbf16> to vector<8x8x128xbf16>
    %17 = vector.extract_strided_slice %14 {offsets = [0, 2, 0], sizes = [8, 8, 128], strides = [1, 1, 1]} : vector<8x10x128xbf16> to vector<8x8x128xbf16>
    %18 = tpu.concatenate %5, %6, %7, %10, %11, %12, %15, %16, %17 in 2 : vector<8x8x128xbf16>, vector<8x8x128xbf16>, vector<8x8x128xbf16>, vector<8x8x128xbf16>, vector<8x8x128xbf16>, vector<8x8x128xbf16>, vector<8x8x128xbf16>, vector<8x8x128xbf16>, vector<8x8x128xbf16> -> vector<8x8x1152xbf16>
    %19 = vector.shape_cast %18 : vector<8x8x1152xbf16> to vector<64x1152xbf16>
    %c0_12 = arith.constant 0 : index
    %c0_13 = arith.constant 0 : index
    %20 = vector.load %arg5[%c0_12, %c0_13] : memref<1152x256xbf16, #tpu.memory_space<vmem>>, vector<1152x256xbf16>
    %cst = arith.constant dense<0.000000e+00> : vector<64x256xf32>
    %21 = tpu.matmul %19, %20, %cst {dimension_numbers = #tpu.dot_dimension_numbers<[1], [0], [0], [1], [0, 0, 1, 1], [], []>} : vector<64x1152xbf16>, vector<1152x256xbf16>, vector<64x256xf32> -> vector<64x256xf32>
    %c0_14 = arith.constant 0 : index
    %c0_15 = arith.constant 0 : index
    %22 = vector.load %arg6[%c0_14, %c0_15] : memref<1x256xf32, #tpu.memory_space<vmem>>, vector<1x256xf32>
    %23 = vector.broadcast %22 : vector<1x256xf32> to vector<64x256xf32>
    %24 = arith.mulf %21, %23 : vector<64x256xf32>
    %c0_16 = arith.constant 0 : index
    %c0_17 = arith.constant 0 : index
    %25 = vector.load %arg7[%c0_16, %c0_17] : memref<1x256xf32, #tpu.memory_space<vmem>>, vector<1x256xf32>
    %26 = vector.broadcast %25 : vector<1x256xf32> to vector<64x256xf32>
    %27 = arith.addf %24, %26 : vector<64x256xf32>
    %cst_18 = arith.constant 0.000000e+00 : f32
    %28 = vector.broadcast %cst_18 : f32 to vector<64x256xf32>
    %29 = arith.maximumf %27, %28 : vector<64x256xf32>
    %c0_19 = arith.constant 0 : index
    %c0_20 = arith.constant 0 : index
    %30 = vector.load %arg17[%c0_19, %c0_20] : memref<8x256xf32, #tpu.memory_space<vmem>>, vector<8x256xf32>
    %31 = vector.shape_cast %29 : vector<64x256xf32> to vector<8x8x256xf32>
    %cst_21 = arith.constant dense<0.000000e+00> : vector<8x256xf32>
    %32 = vector.multi_reduction <add>, %31, %cst_21 [1] : vector<8x8x256xf32> to vector<8x256xf32>
    %33 = arith.addf %30, %32 : vector<8x256xf32>
    %c0_22 = arith.constant 0 : index
    %c0_23 = arith.constant 0 : index
    %34 = vector.load %arg17[%c0_22, %c0_23] : memref<8x256xf32, #tpu.memory_space<vmem>>, vector<8x256xf32>
    tpu.vector_store %arg17[%c0_22, %c0_23], %33 {strides = array<i32>} : memref<8x256xf32, #tpu.memory_space<vmem>>, vector<8x256xf32>,
    %c7_i32 = arith.constant 7 : i32
    %35 = arith.cmpi eq, %arg1, %c7_i32 : i32
    %36 = arith.extui %35 : i1 to i32
    %c0_i32_24 = arith.constant 0 : i32
    %37 = arith.cmpi ne, %36, %c0_i32_24 : i32
    scf.if %37 {
      %c0_25 = arith.constant 0 : index
      %c0_26 = arith.constant 0 : index
      %38 = vector.load %arg17[%c0_25, %c0_26] : memref<8x256xf32, #tpu.memory_space<vmem>>, vector<8x256xf32>
      %cst_27 = arith.constant 1.562500e-02 : f32
      %39 = vector.broadcast %cst_27 : f32 to vector<8x256xf32>
      %40 = arith.mulf %38, %39 : vector<8x256xf32>
      %41 = arith.truncf %40 : vector<8x256xf32> to vector<8x256xbf16>
      %c0_28 = arith.constant 0 : index
      %c0_29 = arith.constant 0 : index
      %42 = vector.load %arg8[%c0_28, %c0_29] : memref<256x512xbf16, #tpu.memory_space<vmem>>, vector<256x512xbf16>
      %cst_30 = arith.constant dense<0.000000e+00> : vector<8x512xf32>
      %43 = tpu.matmul %41, %42, %cst_30 {dimension_numbers = #tpu.dot_dimension_numbers<[1], [0], [0], [1], [0, 0, 1, 1], [], []>} : vector<8x256xbf16>, vector<256x512xbf16>, vector<8x512xf32> -> vector<8x512xf32>
      %c0_31 = arith.constant 0 : index
      %c0_32 = arith.constant 0 : index
      %44 = vector.load %arg9[%c0_31, %c0_32] : memref<1x512xf32, #tpu.memory_space<vmem>>, vector<1x512xf32>
      %45 = vector.broadcast %44 : vector<1x512xf32> to vector<8x512xf32>
      %46 = arith.mulf %43, %45 : vector<8x512xf32>
      %c0_33 = arith.constant 0 : index
      %c0_34 = arith.constant 0 : index
      %47 = vector.load %arg10[%c0_33, %c0_34] : memref<1x512xf32, #tpu.memory_space<vmem>>, vector<1x512xf32>
      %48 = vector.broadcast %47 : vector<1x512xf32> to vector<8x512xf32>
      %49 = arith.addf %46, %48 : vector<8x512xf32>
      %cst_35 = arith.constant 0.000000e+00 : f32
      %50 = vector.broadcast %cst_35 : f32 to vector<8x512xf32>
      %51 = arith.maximumf %49, %50 : vector<8x512xf32>
      %52 = arith.truncf %51 : vector<8x512xf32> to vector<8x512xbf16>
      %c0_36 = arith.constant 0 : index
      %c0_37 = arith.constant 0 : index
      %53 = vector.load %arg11[%c0_36, %c0_37] : memref<512x256xbf16, #tpu.memory_space<vmem>>, vector<512x256xbf16>
      %cst_38 = arith.constant dense<0.000000e+00> : vector<8x256xf32>
      %54 = tpu.matmul %52, %53, %cst_38 {dimension_numbers = #tpu.dot_dimension_numbers<[1], [0], [0], [1], [0, 0, 1, 1], [], []>} : vector<8x512xbf16>, vector<512x256xbf16>, vector<8x256xf32> -> vector<8x256xf32>
      %c0_39 = arith.constant 0 : index
      %c0_40 = arith.constant 0 : index
      %55 = vector.load %arg12[%c0_39, %c0_40] : memref<1x256xf32, #tpu.memory_space<vmem>>, vector<1x256xf32>
      %56 = vector.broadcast %55 : vector<1x256xf32> to vector<8x256xf32>
      %57 = arith.mulf %54, %56 : vector<8x256xf32>
      %c0_41 = arith.constant 0 : index
      %c0_42 = arith.constant 0 : index
      %58 = vector.load %arg13[%c0_41, %c0_42] : memref<1x256xf32, #tpu.memory_space<vmem>>, vector<1x256xf32>
      %59 = vector.broadcast %58 : vector<1x256xf32> to vector<8x256xf32>
      %60 = arith.addf %57, %59 : vector<8x256xf32>
      %cst_43 = arith.constant 0.000000e+00 : f32
      %61 = vector.broadcast %cst_43 : f32 to vector<8x256xf32>
      %62 = arith.maximumf %60, %61 : vector<8x256xf32>
      %63 = arith.truncf %62 : vector<8x256xf32> to vector<8x256xbf16>
      %c0_44 = arith.constant 0 : index
      %c0_45 = arith.constant 0 : index
      %64 = vector.load %arg14[%c0_44, %c0_45] : memref<256x128xbf16, #tpu.memory_space<vmem>>, vector<256x128xbf16>
      %cst_46 = arith.constant dense<0.000000e+00> : vector<8x128xf32>
      %65 = tpu.matmul %63, %64, %cst_46 {dimension_numbers = #tpu.dot_dimension_numbers<[1], [0], [0], [1], [0, 0, 1, 1], [], []>} : vector<8x256xbf16>, vector<256x128xbf16>, vector<8x128xf32> -> vector<8x128xf32>
      %c0_47 = arith.constant 0 : index
      %c0_48 = arith.constant 0 : index
      %66 = memref.load %arg15[%c0_47, %c0_48] : memref<1x1xf32, #tpu.memory_space<smem>>
      %67 = vector.broadcast %66 : f32 to vector<8x128xf32>
      %68 = arith.addf %65, %67 : vector<8x128xf32>
      %69 = arith.negf %68 : vector<8x128xf32>
      %70 = math.exp %69 : vector<8x128xf32>
      %cst_49 = arith.constant 1.000000e+00 : f32
      %71 = vector.broadcast %cst_49 : f32 to vector<8x128xf32>
      %72 = arith.addf %71, %70 : vector<8x128xf32>
      %73 = arith.divf %71, %72 : vector<8x128xf32>
      %c0_50 = arith.constant 0 : index
      %c0_51 = arith.constant 0 : index
      %74 = vector.load %arg16[%c0_50, %c0_51] : memref<8x128xf32, #tpu.memory_space<vmem>>, vector<8x128xf32>
      tpu.vector_store %arg16[%c0_50, %c0_51], %73 {strides = array<i32>} : memref<8x128xf32, #tpu.memory_space<vmem>>, vector<8x128xf32>,
    } else {
    }
    return
  }
  func.func @transform_0(%arg0: i32, %arg1: i32) -> (i32, i32, i32, i32) {
    %c0_i32 = arith.constant 0 : i32
    %0 = arith.addi %arg1, %c0_i32 : i32
    %c0_i32_0 = arith.constant 0 : i32
    %c0_i32_1 = arith.constant 0 : i32
    %c0_i32_2 = arith.constant 0 : i32
    return %arg0, %0, %c0_i32_0, %c0_i32_1 : i32, i32, i32, i32
  }
  func.func @transform_1(%arg0: i32, %arg1: i32) -> (i32, i32, i32, i32) {
    %c1_i32 = arith.constant 1 : i32
    %0 = arith.addi %arg1, %c1_i32 : i32
    %c0_i32 = arith.constant 0 : i32
    %c0_i32_0 = arith.constant 0 : i32
    %c0_i32_1 = arith.constant 0 : i32
    return %arg0, %0, %c0_i32, %c0_i32_0 : i32, i32, i32, i32
  }
  func.func @transform_2(%arg0: i32, %arg1: i32) -> (i32, i32, i32, i32) {
    %c2_i32 = arith.constant 2 : i32
    %0 = arith.addi %arg1, %c2_i32 : i32
    %c0_i32 = arith.constant 0 : i32
    %c0_i32_0 = arith.constant 0 : i32
    %c0_i32_1 = arith.constant 0 : i32
    return %arg0, %0, %c0_i32, %c0_i32_0 : i32, i32, i32, i32
  }
  func.func @transform_3(%arg0: i32, %arg1: i32) -> (i32, i32) {
    %c0_i32 = arith.constant 0 : i32
    %c0_i32_0 = arith.constant 0 : i32
    %c0_i32_1 = arith.constant 0 : i32
    return %c0_i32, %c0_i32_0 : i32, i32
  }
  func.func @transform_4(%arg0: i32, %arg1: i32) -> (i32, i32) {
    %c0_i32 = arith.constant 0 : i32
    %c0_i32_0 = arith.constant 0 : i32
    %c0_i32_1 = arith.constant 0 : i32
    return %c0_i32, %c0_i32_0 : i32, i32
  }
  func.func @transform_5(%arg0: i32, %arg1: i32) -> (i32, i32) {
    %c0_i32 = arith.constant 0 : i32
    %c0_i32_0 = arith.constant 0 : i32
    %c0_i32_1 = arith.constant 0 : i32
    return %c0_i32, %c0_i32_0 : i32, i32
  }
  func.func @transform_6(%arg0: i32, %arg1: i32) -> (i32, i32) {
    %c0_i32 = arith.constant 0 : i32
    %c0_i32_0 = arith.constant 0 : i32
    %c0_i32_1 = arith.constant 0 : i32
    return %c0_i32, %c0_i32_0 : i32, i32
  }
  func.func @transform_7(%arg0: i32, %arg1: i32) -> (i32, i32) {
    %c0_i32 = arith.constant 0 : i32
    %c0_i32_0 = arith.constant 0 : i32
    %c0_i32_1 = arith.constant 0 : i32
    return %c0_i32, %c0_i32_0 : i32, i32
  }
  func.func @transform_8(%arg0: i32, %arg1: i32) -> (i32, i32) {
    %c0_i32 = arith.constant 0 : i32
    %c0_i32_0 = arith.constant 0 : i32
    %c0_i32_1 = arith.constant 0 : i32
    return %c0_i32, %c0_i32_0 : i32, i32
  }
  func.func @transform_9(%arg0: i32, %arg1: i32) -> (i32, i32) {
    %c0_i32 = arith.constant 0 : i32
    %c0_i32_0 = arith.constant 0 : i32
    %c0_i32_1 = arith.constant 0 : i32
    return %c0_i32, %c0_i32_0 : i32, i32
  }
  func.func @transform_10(%arg0: i32, %arg1: i32) -> (i32, i32) {
    %c0_i32 = arith.constant 0 : i32
    %c0_i32_0 = arith.constant 0 : i32
    %c0_i32_1 = arith.constant 0 : i32
    return %c0_i32, %c0_i32_0 : i32, i32
  }
  func.func @transform_11(%arg0: i32, %arg1: i32) -> (i32, i32) {
    %c0_i32 = arith.constant 0 : i32
    %c0_i32_0 = arith.constant 0 : i32
    %c0_i32_1 = arith.constant 0 : i32
    return %c0_i32, %c0_i32_0 : i32, i32
  }
  func.func @transform_12(%arg0: i32, %arg1: i32) -> (i32, i32) {
    %c0_i32 = arith.constant 0 : i32
    %c0_i32_0 = arith.constant 0 : i32
    %c0_i32_1 = arith.constant 0 : i32
    return %c0_i32, %c0_i32_0 : i32, i32
  }
  func.func @transform_13(%arg0: i32, %arg1: i32) -> (i32, i32) {
    %c0_i32 = arith.constant 0 : i32
    %c0_i32_0 = arith.constant 0 : i32
    %c0_i32_1 = arith.constant 0 : i32
    return %c0_i32, %c0_i32_0 : i32, i32
  }
  func.func @transform_14(%arg0: i32, %arg1: i32) -> (i32, i32) {
    %c0_i32 = arith.constant 0 : i32
    %c0_i32_0 = arith.constant 0 : i32
    return %arg0, %c0_i32 : i32, i32
  }
}

</mosaic_0001>

<bundles_post_ra>
// kernel: tpu_custom_call.1
= control target key start
LH: loop header
LB: loop body
LE: loop exit
PB: predicated region body
PF: predicated region fallthrough
CT: control target
= control target key end

     0   :  { %s6961_s0 = inlined_call_operand.vmem [shape: bf16[16,10,10,128], index: 0, kind: input, shape index: {}]   ;;  %s6962_s1 = inlined_call_operand.vmem [shape: bf16[16,10,10,128], index: 1, kind: input, shape index: {}]   ;;  %s6963_s2 = inlined_call_operand.vmem [shape: bf16[16,10,10,128], index: 2, kind: input, shape index: {}]   ;;  %s6964_s3 = inlined_call_operand.vmem [shape: bf16[1152,256], index: 3, kind: input, shape index: {}]   ;;  %s6965_s4 = inlined_call_operand.vmem [shape: f32[1,256], index: 4, kind: input, shape index: {}]   ;;  %s6966_s5 = inlined_call_operand.vmem [shape: f32[1,256], index: 5, kind: input, shape index: {}]   ;;  %s6967_s6 = inlined_call_operand.vmem [shape: bf16[256,512], index: 6, kind: input, shape index: {}]   ;;  %s6968_s7 = inlined_call_operand.vmem [shape: f32[1,512], index: 7, kind: input, shape index: {}]   ;;  %s6969_s8 = inlined_call_operand.vmem [shape: f32[1,512], index: 8, kind: input, shape index: {}]   ;;  %s6970_s9 = inlined_call_operand.vmem [shape: bf16[512,256], index: 9, kind: input, shape index: {}]   ;;  %s6971_s10 = inlined_call_operand.vmem [shape: f32[1,256], index: 10, kind: input, shape index: {}]   ;;  %s6972_s11 = inlined_call_operand.vmem [shape: f32[1,256], index: 11, kind: input, shape index: {}]   ;;  %s6973_s12 = inlined_call_operand.vmem [shape: bf16[256,128], index: 12, kind: input, shape index: {}]   ;;  %s6974_s13 = inlined_call_operand.<no memory space> [shape: f32[1,1], index: 13, kind: input, shape index: {}]   ;;  %s6975_s14 = inlined_call_operand.hbm [shape: f32[16,128], index: 14, kind: output, shape index: {}]  }
   0x1   :  { %6984 = sst [smem:[#allocation17_spill]] %s6961_s0 }
   0x2   :  { %6985 = sst [smem:[#allocation18_spill]] %s6962_s1 }
   0x3   :  { %6986 = sst [smem:[#allocation19_spill]] %s6963_s2 }
   0x4   :  { %6987 = sst [smem:[#allocation20_spill]] %s6964_s3 }
   0x5   :  { %6988 = sst [smem:[#allocation21_spill]] %s6965_s4 }
   0x6   :  { %6989 = sst [smem:[#allocation22_spill]] %s6966_s5 }
   0x7   :  { %6990 = sst [smem:[#allocation23_spill]] %s6967_s6 }
   0x8   :  { %6991 = sst [smem:[#allocation24_spill]] %s6968_s7 }
   0x9   :  { %6992 = sst [smem:[#allocation25_spill]] %s6969_s8 }
   0xa   :  { %6993 = sst [smem:[#allocation26_spill]] %s6970_s9 }
   0xb   :  { %6994 = sst [smem:[#allocation27_spill]] %s6971_s10 }
   0xc   :  { %6995 = sst [smem:[#allocation28_spill]] %s6972_s11 }
   0xd   :  { %6996 = sst [smem:[#allocation29_spill]] %s6973_s12 }
   0xe   :  { %6997 = sst [smem:[#allocation30_spill]] %s6975_s14 }
   0xf   :  { %19 = sst [smem:[#allocation3]] %s6974_s13 }
  0x10   :  { %20 = vsyncpa [#allocation8], 0 }
  0x11   :  { %22 = vsyncpa [#allocation8 + $0x1], 0  ;;  %s5452_s15 = smov 0   ;;  %s5454_s16 = smov 0  }
  0x12   :  { %s5456_s17 = smov 0   ;;  %s5458_s18 = smov 0  }
  0x13   :  { %s5460_s19 = smov 0   ;;  %s5462_s20 = smov 0  }
  0x14   :  { %s5464_s21 = smov 0   ;;  %s5466_s22 = smov 0  }
  0x15   :  { %s5468_s23 = smov 0   ;;  %s5470_s13 = smov 0  }
  0x16   :  { %s5472_s24 = smov 0   ;;  %s5474_s25 = smov 0  }
  0x17   :  { %s5476_s26 = smov 0   ;;  %s5478_s27 = smov 0  }
  0x18 LB: > { %6998 = sst [smem:[#allocation10_spill]] %s5353_s13  ;;  %s37_s30 = sadd.s32 1, %s5361_s25  ;;  %s5369_s27 = sphi %s5478_s27, %s28_s27   ;;  %s5365_s26 = sphi %s5476_s26, %s7051_s26   ;;  %s5361_s25 = sphi %s5474_s25, %s7050_s25   ;;  %s5357_s24 = sphi %s5472_s24, %s7049_s24   ;;  %s5353_s13 = sphi %s5470_s13, %s7048_s13   ;;  %s5349_s23 = sphi %s5468_s23, %s7047_s23   ;;  %s5345_s22 = sphi %s5466_s22, %s7046_s22   ;;  %s5341_s21 = sphi %s5464_s21, %s7045_s21   ;;  %s5337_s20 = sphi %s5462_s20, %s7044_s20   ;;  %s5333_s19 = sphi %s5460_s19, %s7043_s19   ;;  %s5329_s18 = sphi %s5458_s18, %s7042_s18   ;;  %s5325_s17 = sphi %s5456_s17, %s7041_s17   ;;  %s5321_s16 = sphi %s5454_s16, %s7040_s16   ;;  %s5317_s15 = sphi %s5452_s15, %s7039_s15  }
  0x19   : > { %6999 = sst [smem:[#allocation11_spill]] %s5357_s24  ;;  %s40_s14 = sadd.s32 1, %s5365_s26 }
  0x1a   : > { %p38_p0 = scmp.ge.s32.totalorder %s37_s30, 8  ;;  %s49_s24 = sadd.s32 1, %s5349_s23 }
  0x1b   : > { %p56_p1 = scmp.ne.s32.totalorder %s5349_s23, %s5345_s22  ;;  %p57_p2 = scmp.eq.s32.totalorder %s5369_s27, 0 }
  0x1c   : > { %s5530_s11 = scalar_select %p38_p0, 0, %s37_s30  }
  0x1d   : > { %s7053_s14 = smov (!%p38_p0, %s40_s14), %s5365_s26  ;;  %p5537_p3 = por %p57_p2, %p56_p1 }
  0x1e   : > { %7000 = sst [smem:[#allocation12_spill]] %s5530_s11  ;;  %s45_s10 = ssub.s32 %s5361_s25, %s5530_s11 }
  0x1f   : > { %p42_p4 = scmp.ge.s32.totalorder %s7053_s14, 2  ;;  %s73_s28 = sadd.s32 1, %s5530_s11 }
  0x20   : > { %s75_s8 = ssub.s32 %s37_s30, %s73_s28  ;;  %s79_s7 = sadd.s32 1, %s5341_s21 }
  0x21   : > { %s7055_s14 = smov (%p42_p4, %s7053_s14), 0  ;;  %p86_p5 = scmp.ne.s32.totalorder %s5341_s21, %s5337_s20 }
  0x22   : > { %7002 = sst [smem:[#allocation13_spill]] %s7055_s14  ;;  %s102_s12 = sadd.s32 2, %s5361_s25 }
  0x23   : > { %s44_s9 = ssub.s32 %s5365_s26, %s7055_s14  ;;  %s103_s6 = sadd.s32 2, %s5530_s11 }
  0x24   : > { %s46_s5 = sor.u32 %s45_s10, %s44_s9  ;;  %s76_s4 = sor.u32 %s75_s8, %s44_s9 }
  0x25   : > { %p47_p6 = scmp.eq.s32.totalorder %s46_s5, 0  ;;  %p77_p7 = scmp.eq.s32.totalorder %s76_s4, 0 }
  0x26   : > { %p5553_p8 = por %p86_p5, %p57_p2  ;;  %s105_s30 = ssub.s32 %s102_s12, %s103_s6 }
  0x27   : > { %s5558_s14 = scalar_select %p47_p6, %s5349_s23, %s49_s24  }
  0x28   : > { %s5561_s11 = scalar_select %p77_p7, %s5341_s21, %s79_s7  }
  0x29   : > { %7004 = sst [smem:[#allocation14_spill]] %s5558_s14  ;;  %s106_s10 = sor.u32 %s105_s30, %s44_s9 }
  0x2a   : > { %7005 = sst [smem:[#allocation15_spill]] %s5561_s11  ;;  %s109_s3 = sadd.s32 1, %s5333_s19 }
  0x2b   : > { %p107_p9 = scmp.eq.s32.totalorder %s106_s10, 0  ;;  %p116_p10 = scmp.ne.s32.totalorder %s5333_s19, %s5329_s18 }
  0x2c   : > { %p364_p11 = scmp.eq.s32.totalorder %s44_s9, 0  ;;  %s366_s5 = sadd.s32 1, %s5325_s17 }
  0x2d   : > { %s5568_s4 = scalar_select %p107_p9, %s5333_s19, %s109_s3  }
  0x2e   : > { %p5572_p12 = por %p116_p10, %p57_p2  ;;  %p376_p13 = scmp.ne.s32.totalorder %s5325_s17, %s5321_s16 }
  0x2f   : > { %7006 = sst [smem:[#allocation16_spill]] %s5568_s4  ;;  %s7008_s6 = sadd.s32 4294967295, %s5369_s27  }
  0x30   : > { %s5579_s13 = scalar_select %p364_p11, %s5325_s17, %s366_s5  }
  0x31   : > { %p377_p0 = scmp.eq.s32.totalorder %s7008_s6, 15  ;;  %p382_p1 = scmp.ne.s32.totalorder %s5321_s16, %s5317_s15 }
  0x32   : > { %s7009_s7 = sadd.s32 4294967294, %s5369_s27   ;;  %p4131_p2 = scmp.ge.s32.totalorder %s5369_s27, 16 }
  0x33   : > { %p383_p4 = scmp.eq.s32.totalorder %s7009_s7, 15  ;;  %p5587_p5 = por %p377_p0, %p376_p13 }
  0x34   : > { %432 = sbr.rel (%p4131_p2) target bundleno = 101 (0x65), region = 60 }
  0x35   : > { %p5591_p6 = por %p383_p4, %p382_p1 }
  0x3b   : > { %435 = sbr.rel (!%p5537_p3) target bundleno = 73 (0x49), region = 64  ;;  %s437_s9 = sand.u32 (%p5537_p3), 1, %s5349_s23  }
  0x3c   : > { %s4134_s24 = sshll.u32 (%p5537_p3), %s5361_s25, 1  ;;  %s4132_s30 = sshll.u32 (%p5537_p3), %s437_s9, 6 }
  0x3d   : > { %s4641_s10 = smul.u32 (%p5537_p3), 160, %s5365_s26  ;;  %s7012_s0 = sld [smem:[#allocation17_spill]] (%p5537_p3) }
  0x3e   : > { %s439_s4 = scalar_lea.vmem (%p5537_p3), [#allocation4], %s4132_s30 }
  0x3f   : > { %s443_s5 = sadd.s32 (%p5537_p3), %s4641_s10, %s4134_s24 }
  0x40   : > { %s4136_s6 = sshll.u32 (%p5537_p3), %s443_s5, 2 }
  0x43   : > { %s445_s11 = scalar_lea.vmem %s7012_s0, %s4136_s6 }
  0x44   : > { %v461_v0 = vld [vmem:[%s445_s11] sm:$0xff]   ;;  %v465_v1 = vld [vmem:[%s445_s11 + $0x50] sm:$0xff]  }
  0x45   : > { %v469_v2 = vld [vmem:[%s445_s11 + $0xa0] sm:$0xff]   ;;  %462 = vst [vmem:[%s439_s4] sm:$0xff] %v461_v0   ;;  %466 = vst [vmem:[%s439_s4 + $0x8] sm:$0xff] %v465_v1   ;;  %v473_v3 = vld [vmem:[%s445_s11 + $0xf0] sm:$0xff]  }
  0x46   : > { %470 = vst [vmem:[%s439_s4 + $0x10] sm:$0xff] %v469_v2   ;;  %v477_v4 = vld [vmem:[%s445_s11 + $0x140] sm:$0xff]   ;;  %v481_v5 = vld [vmem:[%s445_s11 + $0x190] sm:$0xff]   ;;  %474 = vst [vmem:[%s439_s4 + $0x18] sm:$0xff] %v473_v3  }
  0x47   : > { %478 = vst [vmem:[%s439_s4 + $0x20] sm:$0xff] %v477_v4   ;;  %482 = vst [vmem:[%s439_s4 + $0x28] sm:$0xff] %v481_v5   ;;  %v485_v6 = vld [vmem:[%s445_s11 + $0x1e0] sm:$0xff]   ;;  %v489_v7 = vld [vmem:[%s445_s11 + $0x230] sm:$0xff]  }
  0x48   : > { %486 = vst [vmem:[%s439_s4 + $0x30] sm:$0xff] %v485_v6   ;;  %490 = vst [vmem:[%s439_s4 + $0x38] sm:$0xff] %v489_v7  }
  0x49 PF: > { %547 = sbr.rel (!%p5553_p8) target bundleno = 87 (0x57), region = 105  ;;  %s549_s14 = sand.u32 (%p5553_p8), 1, %s5341_s21  }
  0x4a   : > { %s4138_s29 = sshll.u32 (%p5553_p8), %s5361_s25, 1  ;;  %s4137_s9 = sshll.u32 (%p5553_p8), %s549_s14, 6 }
  0x4b   : > { %s4036_s24 = smul.u32 (%p5553_p8), 160, %s5365_s26  ;;  %s7013_s1 = sld [smem:[#allocation18_spill]] (%p5553_p8) }
  0x4c   : > { %s551_s11 = scalar_lea.vmem (%p5553_p8), [#allocation5], %s4137_s9 }
  0x4d   : > { %s4037_s30 = sadd.s32 (%p5553_p8), %s4138_s29, %s4036_s24 }
  0x4e   : > { %s4139_s10 = sshll.u32 (%p5553_p8), %s4037_s30, 2 }
  0x51   : > { %s4039_s7 = scalar_lea.vmem %s7013_s1, %s4139_s10 }
  0x52   : > { %v4140_v8 = vld [vmem:[%s4039_s7 + $0x8] sm:$0xff]   ;;  %v4142_v9 = vld [vmem:[%s4039_s7 + $0x58] sm:$0xff]  }
  0x53   : > { %v4144_v10 = vld [vmem:[%s4039_s7 + $0xa8] sm:$0xff]   ;;  %575 = vst [vmem:[%s551_s11] sm:$0xff] %v4140_v8   ;;  %579 = vst [vmem:[%s551_s11 + $0x8] sm:$0xff] %v4142_v9   ;;  %v4146_v11 = vld [vmem:[%s4039_s7 + $0xf8] sm:$0xff]  }
  0x54   : > { %583 = vst [vmem:[%s551_s11 + $0x10] sm:$0xff] %v4144_v10   ;;  %v4148_v12 = vld [vmem:[%s4039_s7 + $0x148] sm:$0xff]   ;;  %v4150_v13 = vld [vmem:[%s4039_s7 + $0x198] sm:$0xff]   ;;  %587 = vst [vmem:[%s551_s11 + $0x18] sm:$0xff] %v4146_v11  }
  0x55   : > { %591 = vst [vmem:[%s551_s11 + $0x20] sm:$0xff] %v4148_v12   ;;  %595 = vst [vmem:[%s551_s11 + $0x28] sm:$0xff] %v4150_v13   ;;  %v4152_v14 = vld [vmem:[%s4039_s7 + $0x1e8] sm:$0xff]   ;;  %v4154_v15 = vld [vmem:[%s4039_s7 + $0x238] sm:$0xff]  }
  0x56   : > { %599 = vst [vmem:[%s551_s11 + $0x30] sm:$0xff] %v4152_v14   ;;  %603 = vst [vmem:[%s551_s11 + $0x38] sm:$0xff] %v4154_v15  }
  0x57 PF: > { %660 = sbr.rel (!%p5572_p12) target bundleno = 101 (0x65), region = 146  ;;  %s662_s28 = sand.u32 (%p5572_p12), 1, %s5333_s19  }
  0x58   : > { %s4157_s4 = sshll.u32 (%p5572_p12), %s5361_s25, 1  ;;  %s4156_s14 = sshll.u32 (%p5572_p12), %s662_s28, 6 }
  0x59   : > { %s4044_s29 = smul.u32 (%p5572_p12), 160, %s5365_s26  ;;  %s7014_s2 = sld [smem:[#allocation19_spill]] (%p5572_p12) }
  0x5a   : > { %s664_s6 = scalar_lea.vmem (%p5572_p12), [#allocation6], %s4156_s14 }
  0x5b   : > { %s4045_s9 = sadd.s32 (%p5572_p12), %s4157_s4, %s4044_s29 }
  0x5c   : > { %s4158_s24 = sshll.u32 (%p5572_p12), %s4045_s9, 2 }
  0x5f   : > { %s4047_s5 = scalar_lea.vmem %s7014_s2, %s4158_s24 }
  0x60   : > { %v4159_v16 = vld [vmem:[%s4047_s5 + $0x10] sm:$0xff]   ;;  %v4161_v17 = vld [vmem:[%s4047_s5 + $0x60] sm:$0xff]  }
  0x61   : > { %v4163_v18 = vld [vmem:[%s4047_s5 + $0xb0] sm:$0xff]   ;;  %688 = vst [vmem:[%s664_s6] sm:$0xff] %v4159_v16   ;;  %692 = vst [vmem:[%s664_s6 + $0x8] sm:$0xff] %v4161_v17   ;;  %v4165_v19 = vld [vmem:[%s4047_s5 + $0x100] sm:$0xff]  }
  0x62   : > { %696 = vst [vmem:[%s664_s6 + $0x10] sm:$0xff] %v4163_v18   ;;  %v4167_v20 = vld [vmem:[%s4047_s5 + $0x150] sm:$0xff]   ;;  %v4169_v21 = vld [vmem:[%s4047_s5 + $0x1a0] sm:$0xff]   ;;  %700 = vst [vmem:[%s664_s6 + $0x18] sm:$0xff] %v4165_v19  }
  0x63   : > { %704 = vst [vmem:[%s664_s6 + $0x20] sm:$0xff] %v4167_v20   ;;  %708 = vst [vmem:[%s664_s6 + $0x28] sm:$0xff] %v4169_v21   ;;  %v4171_v22 = vld [vmem:[%s4047_s5 + $0x1f0] sm:$0xff]   ;;  %v4173_v23 = vld [vmem:[%s4047_s5 + $0x240] sm:$0xff]  }
  0x64   : > { %712 = vst [vmem:[%s664_s6 + $0x30] sm:$0xff] %v4171_v22   ;;  %716 = vst [vmem:[%s664_s6 + $0x38] sm:$0xff] %v4173_v23  }
  0x65 PF: > { %p4175_p3 = scmp.ge.s32.totalorder %s5369_s27, 1  ;;  %p772_p7 = scmp.lt.s32.totalorder %s5369_s27, 17 }
  0x67   : > { %p773_p8 = pnand %p4175_p3, %p772_p7 }
  0x68   : > { %s779_s8 = sand.u32 (!%p773_p8), 1, %s5345_s22   ;;  %s786_s7 = sand.u32 (!%p773_p8), 1, %s5337_s20  }
  0x69   : > { %776 = sbr.rel (%p773_p8) target bundleno = 1381 (0x565), region = 187  ;;  %s4176_s11 = sshll.u32 (!%p773_p8), %s779_s8, 6 }
  0x6a   : > { %s4177_s28 = sshll.u32 (!%p773_p8), %s786_s7, 6  ;;  %s793_s4 = sand.u32 (!%p773_p8), 1, %s5329_s18  }
  0x6b   : > { %s6983_s14 = sand.u32 (!%p773_p8), 1, %s5321_s16   ;;  %s4178_s29 = sshll.u32 (!%p773_p8), %s793_s4, 6 }
  0x6c   : > { %s5628_s9 = sshll.u32 (!%p773_p8), %s6983_s14, 3  ;;  %s5630_s24 = scalar_lea.vmem (!%p773_p8), [#allocation4], %s4176_s11 }
  0x6d   : > { %s5632_s30 = scalar_lea.vmem (!%p773_p8), [#allocation5], %s4177_s28  ;;  %s5634_s10 = scalar_lea.vmem (!%p773_p8), [#allocation6], %s4178_s29 }
  0x6e   : > { %s7015_s6 = sld [smem:[#allocation10_spill]] (!%p773_p8) }
  0x74   : > { %p4180_p9 = scmp.ne.s32.totalorder %s7015_s6, 0 }
  0x75   : > { %v5371_v24 = vmov (!%p4180_p9), 0.0  }
  0x76   : > { %855 = sbr.rel (%p4180_p9) target bundleno = 125 (0x7d), region = 203  ;;  %856 = vst [vmem:[#allocation2] sm:$0xff] (!%p4180_p9), %v5371_v24  ;;  %857 = vst [vmem:[#allocation2 + $0x8] sm:$0xff] (!%p4180_p9), %v5371_v24 }
  0x7d PF: > { %s7016_s22 = sld [smem:[#allocation20_spill]]  ;;  %v5783_v9 = vld [vmem:[%s5630_s24] sm:$0xf]  ;;  %v859_v10 = vld [vmem:[%s5630_s24 + $0x4] sm:$0x1]  ;;  %vm2753_vm0 = vcmask 1041409  }
  0x7e   : > { %v5787_v11 = vld [vmem:[%s5630_s24 + $0x8] sm:$0xf]  ;;  %v861_v12 = vld [vmem:[%s5630_s24 + $0xc] sm:$0x1]  ;;  %v4181_v14 = vcombine.low %v5783_v9, %v859_v10  ;;  %v5799_v17 = vld [vmem:[%s5632_s30] sm:$0xf] }
  0x7f   : > { %v4182_v15 = vcombine.low %v5787_v11, %v861_v12  ;;  %v875_v18 = vld [vmem:[%s5632_s30 + $0x4] sm:$0x1]  ;;  %v5897_v12 = vld [vmem:[%s5630_s24 + $0x10] sm:$0xf]  ;;  %vm2755_vm1 = vcmask 1042434   ;;  %vm2757_vm2 = vcmask 1043459  }
  0x80   : > { %v947_v21 = vshrl.u32 %v4181_v14, 16  ;;  %v949_v22 = vshll.u32 %v4181_v14, 16  ;;  %vm2759_vm3 = vcmask 1044484   ;;  %vm2761_vm4 = vcmask 1045509  }
  0x81   : > { %v954_v23 = vshrl.u32 %v4182_v15, 16  ;;  %v956_v24 = vshll.u32 %v4182_v15, 16  ;;  %vm2763_vm5 = vcmask 1046534   ;;  %vm2765_vm6 = vcmask 1047559  }
  0x83   : > { %s7017_s8 = smov %s7016_s22  ;;  %v4763_v25 = vld [vmem:[%s7016_s22 + $0x4] ss:$8 sps:$4 sm:$0xff]   ;;  %s7020_s22 = sld [smem:[#allocation10_spill]] }
  0x84   : > { %v4765_v26 = vld [vmem:[%s7017_s8 + $0x204] ss:$8 sps:$4 sm:$0xff]   ;;  %2202 = vmatprep.subr.bf16.mxu1 %v4763_v25  ;;  %v4767_v27 = vld [vmem:[%s7017_s8] ss:$8 sps:$4 sm:$0xff]   ;;  %v4769_v29 = vld [vmem:[%s7017_s8 + $0x14] ss:$8 sps:$4 sm:$0xff]  }
  0x85   : > { %v4768_v28 = vld [vmem:[%s7017_s8 + $0x200] ss:$8 sps:$4 sm:$0xff]   ;;  %2348 = vmatprep.subr.bf16.mxu0 %v4765_v26  ;;  %2203 = vmatpush1.bf16.msra.mxu1 %v4767_v27  ;;  %v4771_v30 = vld [vmem:[%s7017_s8 + $0x214] ss:$8 sps:$4 sm:$0xff]   ;;  %v4773_v31 = vld [vmem:[%s7017_s8 + $0x10] ss:$8 sps:$4 sm:$0xff]  }
  0x86   : > { %2349 = vmatpush1.bf16.msra.mxu0 %v4768_v28  ;;  %2204 = vmatprep.subr.bf16.mxu1 %v4769_v29  ;;  %v4774_v32 = vld [vmem:[%s7017_s8 + $0x210] ss:$8 sps:$4 sm:$0xff]   ;;  %v4775_v33 = vld [vmem:[%s7017_s8 + $0x24] ss:$8 sps:$4 sm:$0xff]   ;;  %v4779_v35 = vld [vmem:[%s7017_s8 + $0x20] ss:$8 sps:$4 sm:$0xff]   ;;  %v4189_v29 = vcombine.low %v5799_v17, %v875_v18 }
  0x87   : > { %2350 = vmatprep.subr.bf16.mxu0 %v4771_v30  ;;  %v4777_v34 = vld [vmem:[%s7017_s8 + $0x224] ss:$8 sps:$4 sm:$0xff]   ;;  %v4780_v36 = vld [vmem:[%s7017_s8 + $0x220] ss:$8 sps:$4 sm:$0xff]   ;;  %v4781_v37 = vld [vmem:[%s7017_s8 + $0x34] ss:$8 sps:$4 sm:$0xff]  }
  0x88   : > { %v4783_v38 = vld [vmem:[%s7017_s8 + $0x234] ss:$8 sps:$4 sm:$0xff]   ;;  %v4785_v39 = vld [vmem:[%s7017_s8 + $0x30] ss:$8 sps:$4 sm:$0xff]   ;;  %v4787_v41 = vld [vmem:[%s7017_s8 + $0x44] ss:$8 sps:$4 sm:$0xff]  }
  0x89   : > { %2205 = vmatpush1.bf16.msra.mxu1 %v4773_v31  ;;  %v4786_v40 = vld [vmem:[%s7017_s8 + $0x230] ss:$8 sps:$4 sm:$0xff]   ;;  %v4789_v42 = vld [vmem:[%s7017_s8 + $0x244] ss:$8 sps:$4 sm:$0xff]   ;;  %v4791_v43 = vld [vmem:[%s7017_s8 + $0x40] ss:$8 sps:$4 sm:$0xff]  }
  0x8a   : > { %2351 = vmatpush1.bf16.msra.mxu0 %v4774_v32  ;;  %2206 = vmatprep.subr.bf16.mxu1 %v4775_v33  ;;  %v4792_v44 = vld [vmem:[%s7017_s8 + $0x240] ss:$8 sps:$4 sm:$0xff]   ;;  %v4793_v45 = vld [vmem:[%s7017_s8 + $0x54] ss:$8 sps:$4 sm:$0xff]   ;;  %v4797_v47 = vld [vmem:[%s7017_s8 + $0x50] ss:$8 sps:$4 sm:$0xff]  }
  0x8b   : > { %2352 = vmatprep.subr.bf16.mxu0 %v4777_v34  ;;  %v4795_v46 = vld [vmem:[%s7017_s8 + $0x254] ss:$8 sps:$4 sm:$0xff]   ;;  %v4798_v48 = vld [vmem:[%s7017_s8 + $0x250] ss:$8 sps:$4 sm:$0xff]   ;;  %v4799_v49 = vld [vmem:[%s7017_s8 + $0x64] ss:$8 sps:$4 sm:$0xff]  }
  0x8c   : > { %v4801_v50 = vld [vmem:[%s7017_s8 + $0x264] ss:$8 sps:$4 sm:$0xff]   ;;  %v4803_v51 = vld [vmem:[%s7017_s8 + $0x60] ss:$8 sps:$4 sm:$0xff]   ;;  %v4805_v53 = vld [vmem:[%s7017_s8 + $0x74] ss:$8 sps:$4 sm:$0xff]  }
  0x8d   : > { %2207 = vmatpush1.bf16.msra.mxu1 %v4779_v35  ;;  %v4804_v52 = vld [vmem:[%s7017_s8 + $0x260] ss:$8 sps:$4 sm:$0xff]   ;;  %v4807_v54 = vld [vmem:[%s7017_s8 + $0x274] ss:$8 sps:$4 sm:$0xff]   ;;  %v4809_v55 = vld [vmem:[%s7017_s8 + $0x70] ss:$8 sps:$4 sm:$0xff]  }
  0x8e   : > { %2353 = vmatpush1.bf16.msra.mxu0 %v4780_v36  ;;  %2208 = vmatprep.subr.bf16.mxu1 %v4781_v37  ;;  %v4810_v56 = vld [vmem:[%s7017_s8 + $0x270] ss:$8 sps:$4 sm:$0xff]   ;;  %v4811_v57 = vld [vmem:[%s7017_s8 + $0x84] ss:$8 sps:$4 sm:$0xff]   ;;  %v4815_v59 = vld [vmem:[%s7017_s8 + $0x80] ss:$8 sps:$4 sm:$0xff]  }
  0x8f   : > { %2354 = vmatprep.subr.bf16.mxu0 %v4783_v38  ;;  %v4813_v58 = vld [vmem:[%s7017_s8 + $0x284] ss:$8 sps:$4 sm:$0xff]   ;;  %v4816_v60 = vld [vmem:[%s7017_s8 + $0x280] ss:$8 sps:$4 sm:$0xff]   ;;  %v4817_v61 = vld [vmem:[%s7017_s8 + $0x94] ss:$8 sps:$4 sm:$0xff]  }
  0x90   : > { %v4819_v62 = vld [vmem:[%s7017_s8 + $0x294] ss:$8 sps:$4 sm:$0xff]   ;;  %v4821_v63 = vld [vmem:[%s7017_s8 + $0x90] ss:$8 sps:$4 sm:$0xff]   ;;  %v4823_v1 = vld [vmem:[%s7017_s8 + $0xa4] ss:$8 sps:$4 sm:$0xff]  }
  0x91   : > { %2209 = vmatpush1.bf16.msra.mxu1 %v4785_v39  ;;  %v4822_v0 = vld [vmem:[%s7017_s8 + $0x290] ss:$8 sps:$4 sm:$0xff]   ;;  %v4825_v2 = vld [vmem:[%s7017_s8 + $0x2a4] ss:$8 sps:$4 sm:$0xff]   ;;  %v4827_v3 = vld [vmem:[%s7017_s8 + $0xa0] ss:$8 sps:$4 sm:$0xff]  }
  0x92   : > { %2355 = vmatpush1.bf16.msra.mxu0 %v4786_v40  ;;  %2210 = vmatprep.subr.bf16.mxu1 %v4787_v41  ;;  %v4828_v4 = vld [vmem:[%s7017_s8 + $0x2a0] ss:$8 sps:$4 sm:$0xff]   ;;  %v4829_v5 = vld [vmem:[%s7017_s8 + $0xb4] ss:$8 sps:$4 sm:$0xff]   ;;  %v4833_v7 = vld [vmem:[%s7017_s8 + $0xb0] ss:$8 sps:$4 sm:$0xff]  }
  0x93   : > { %2356 = vmatprep.subr.bf16.mxu0 %v4789_v42  ;;  %v4831_v6 = vld [vmem:[%s7017_s8 + $0x2b4] ss:$8 sps:$4 sm:$0xff]   ;;  %v4834_v8 = vld [vmem:[%s7017_s8 + $0x2b0] ss:$8 sps:$4 sm:$0xff]   ;;  %v4835_v13 = vld [vmem:[%s7017_s8 + $0xc4] ss:$8 sps:$4 sm:$0xff]  }
  0x94   : > { %v4837_v16 = vld [vmem:[%s7017_s8 + $0x2c4] ss:$8 sps:$4 sm:$0xff]   ;;  %v4839_v19 = vld [vmem:[%s7017_s8 + $0xc0] ss:$8 sps:$4 sm:$0xff]   ;;  %v5809_v25 = vld [vmem:[%s5632_s30 + $0x8] sm:$0xf] }
  0x95   : > { %2211 = vmatpush1.bf16.msra.mxu1 %v4791_v43  ;;  %v4840_v20 = vld [vmem:[%s7017_s8 + $0x2c0] ss:$8 sps:$4 sm:$0xff]   ;;  %v1002_v26 = vrot.slane %v4181_v14, 1  ;;  %v1003_v27 = vrot.slane %v4182_v15, 1  ;;  %v877_v28 = vld [vmem:[%s5632_s30 + $0xc] sm:$0x1] }
  0x96   : > { %2357 = vmatpush1.bf16.msra.mxu0 %v4792_v44  ;;  %2212 = vmatprep.subr.bf16.mxu1 %v4793_v45  ;;  %v4841_v30 = vld [vmem:[%s7017_s8 + $0xd4] ss:$8 sps:$4 sm:$0xff]   ;;  %v951_v32 = vrot.slane %v949_v22, 1  ;;  %v958_v33 = vrot.slane %v956_v24, 1  ;;  %v4190_v34 = vcombine.low %v5809_v25, %v877_v28  ;;  %v1106_v35 = vrot.slane %v4189_v29, 1  ;;  %p4385_p10 = scmp.ne.s32.totalorder %s7020_s22, 7 }
  0x97   : > { %2358 = vmatprep.subr.bf16.mxu0 %v4795_v46  ;;  %v4843_v31 = vld [vmem:[%s7017_s8 + $0x2d4] ss:$8 sps:$4 sm:$0xff]   ;;  %v5820_v36 = vcombine.low %v1002_v26, %v1003_v27  ;;  %v4845_v40 = vld [vmem:[%s7017_s8 + $0xd0] ss:$8 sps:$4 sm:$0xff]   ;;  %v1053_v41 = vshll.u32 %v4189_v29, 16  ;;  %s7021_s4 = sld [smem:[#allocation23_spill]] (!%p4385_p10) }
  0x98   : > { %v952_v37 = vor.u32 %v951_v32, %v947_v21  ;;  %v959_v38 = vor.u32 %v958_v33, %v954_v23  ;;  %v1107_v39 = vrot.slane %v4190_v34, 1  ;;  %v1060_v42 = vshll.u32 %v4190_v34, 16  ;;  %v4846_v43 = vld [vmem:[%s7017_s8 + $0x2d0] ss:$8 sps:$4 sm:$0xff]   ;;  %v4847_v44 = vld [vmem:[%s7017_s8 + $0xe4] ss:$8 sps:$4 sm:$0xff]  }
  0x99   : > { %2213 = vmatpush1.bf16.msra.mxu1 %v4797_v47  ;;  %v4849_v47 = vld [vmem:[%s7017_s8 + $0x2e4] ss:$8 sps:$4 sm:$0xff]   ;;  %v4884_v10 = vld [vmem:[%s7017_s8 + $0x134] ss:$8 sps:$4 sm:$0xff]   ;;  %v4882_v14 = vld [vmem:[%s7017_s8 + $0x130] ss:$8 sps:$4 sm:$0xff]  }
  0x9a   : > { %2359 = vmatpush1.bf16.msra.mxu0 %v4798_v48  ;;  %2214 = vmatprep.subr.bf16.mxu1 %v4799_v49  ;;  %v4206_v45 = vcombine.low %v952_v37, %v959_v38  ;;  %v4210_v46 = vcombine.low %v1106_v35, %v1107_v39  ;;  %v4851_v48 = vld [vmem:[%s7017_s8 + $0xe0] ss:$8 sps:$4 sm:$0xff]   ;;  %v4885_v15 = vld [vmem:[%s7017_s8 + $0x330] ss:$8 sps:$4 sm:$0xff]   ;;  %v865_v18 = vld [vmem:[%s5630_s24 + $0x1c] sm:$0x1] }
  0x9b   : > { %2360 = vmatprep.subr.bf16.mxu0 %v4801_v50  ;;  %v4852_v49 = vld [vmem:[%s7017_s8 + $0x2e0] ss:$8 sps:$4 sm:$0xff]   ;;  %v1051_v50 = vshrl.u32 %v4189_v29, 16  ;;  %v879_v22 = vld [vmem:[%s5632_s30 + $0x14] sm:$0x1]  ;;  %s7022_s7 = sld [smem:[#allocation26_spill]] (!%p4385_p10) }
  0x9c   : > { %2234 = vmatprep.mubr.bf16.mxu1 %v4206_v45  ;;  %2380 = vmatprep.mubr.bf16.mxu0 %v4210_v46  ;;  %v5921_v23 = vld [vmem:[%s5632_s30 + $0x18] sm:$0xf]  ;;  %v881_v24 = vld [vmem:[%s5632_s30 + $0x1c] sm:$0x1]  ;;  %v4896_v45 = vld [vmem:[%s7017_s8 + $0x154] ss:$8 sps:$4 sm:$0xff]  }
  0x9d   : > { %2215 = vmatpush1.bf16.msra.mxu1 %v4803_v51  ;;  %v1055_v51 = vrot.slane %v1053_v41, 1  ;;  %v4890_v26 = vld [vmem:[%s7017_s8 + $0x144] ss:$8 sps:$4 sm:$0xff]   ;;  %s7024_s11 = sld [smem:[#allocation24_spill]] (!%p4385_p10)  ;;  %s7025_s14 = sld [smem:[#allocation25_spill]] (!%p4385_p10) }
  0x9e   : > { %2361 = vmatpush1.bf16.msra.mxu0 %v4804_v52  ;;  %2216 = vmatprep.subr.bf16.mxu1 %v4805_v53  ;;  %v1058_v52 = vshrl.u32 %v4190_v34, 16  ;;  %v1062_v53 = vrot.slane %v1060_v42, 1  ;;  %v4888_v34 = vld [vmem:[%s7017_s8 + $0x140] ss:$8 sps:$4 sm:$0xff]   ;;  %s7026_s28 = sld [smem:[#allocation27_spill]] (!%p4385_p10)  ;;  %s7027_s5 = sld [smem:[#allocation28_spill]] (!%p4385_p10) }
  0x9f   : > { %2362 = vmatprep.subr.bf16.mxu0 %v4807_v54  ;;  %v4853_v54 = vld [vmem:[%s7017_s8 + $0xf4] ss:$8 sps:$4 sm:$0xff]   ;;  %s3846_s6 = sld [smem:[#allocation3]] (!%p4385_p10) }
  0xa1   : > { %2217 = vmatpush1.bf16.msra.mxu1 %v4809_v55  ;;  %v4855_v55 = vld [vmem:[%s7017_s8 + $0x2f4] ss:$8 sps:$4 sm:$0xff]  }
  0xa2   : > { %2363 = vmatpush1.bf16.msra.mxu0 %v4810_v56  ;;  %2218 = vmatprep.subr.bf16.mxu1 %v4811_v57  ;;  %v4857_v56 = vld [vmem:[%s7017_s8 + $0xf0] ss:$8 sps:$4 sm:$0xff]  }
  0xa3   : > { %2364 = vmatprep.subr.bf16.mxu0 %v4813_v58  ;;  %v4858_v57 = vld [vmem:[%s7017_s8 + $0x2f0] ss:$8 sps:$4 sm:$0xff]   ;;  %v1056_v58 = vor.u32 %v1055_v51, %v1051_v50 }
  0xa5   : > { %2219 = vmatpush1.bf16.msra.mxu1 %v4815_v59  ;;  %v1063_v59 = vor.u32 %v1062_v53, %v1058_v52  ;;  %v4894_v52 = vld [vmem:[%s7017_s8 + $0x150] ss:$8 sps:$4 sm:$0xff]  }
  0xa6   : > { %2365 = vmatpush1.bf16.msra.mxu0 %v4816_v60  ;;  %2220 = vmatprep.subr.bf16.mxu1 %v4817_v61  ;;  %v4863_v60 = vld [vmem:[%s7017_s8 + $0x104] ss:$8 sps:$4 sm:$0xff]   ;;  %v4897_v53 = vld [vmem:[%s7017_s8 + $0x350] ss:$8 sps:$4 sm:$0xff]  }
  0xa7   : > { %2366 = vmatprep.subr.bf16.mxu0 %v4819_v62  ;;  %v4868_v61 = vld [vmem:[%s7017_s8 + $0x304] ss:$8 sps:$4 sm:$0xff]   ;;  %v4861_v62 = vld [vmem:[%s7017_s8 + $0x100] ss:$8 sps:$4 sm:$0xff]  }
  0xa9   : > { %2221 = vmatpush1.bf16.msra.mxu1 %v4821_v63  ;;  %v4866_v63 = vld [vmem:[%s7017_s8 + $0x300] ss:$8 sps:$4 sm:$0xff]  }
  0xaa   : > { %2367 = vmatpush1.bf16.msra.mxu0 %v4822_v0  ;;  %2222 = vmatprep.subr.bf16.mxu1 %v4823_v1  ;;  %v4205_v0 = vcombine.low %v5783_v9, %v5787_v11  ;;  %v4209_v1 = vcombine.low %v1056_v58, %v1063_v59  ;;  %v4879_v9 = vld [vmem:[%s7017_s8 + $0x320] ss:$8 sps:$4 sm:$0xff]   ;;  %v4887_v11 = vld [vmem:[%s7017_s8 + $0x334] ss:$8 sps:$4 sm:$0xff]  }
  0xab   : > { %2368 = vmatprep.subr.bf16.mxu0 %v4825_v2  ;;  %v4872_v2 = vld [vmem:[%s7017_s8 + $0x114] ss:$8 sps:$4 sm:$0xff]  }
  0xad   : > { %2223 = vmatpush1.bf16.msra.mxu1 %v4827_v3  ;;  %v4875_v3 = vld [vmem:[%s7017_s8 + $0x314] ss:$8 sps:$4 sm:$0xff]  }
  0xae   : > { %2369 = vmatpush1.bf16.msra.mxu0 %v4828_v4  ;;  %2224 = vmatprep.subr.bf16.mxu1 %v4829_v5  ;;  %v4870_v4 = vld [vmem:[%s7017_s8 + $0x110] ss:$8 sps:$4 sm:$0xff]  }
  0xaf   : > { %2370 = vmatprep.subr.bf16.mxu0 %v4831_v6  ;;  %v4873_v5 = vld [vmem:[%s7017_s8 + $0x310] ss:$8 sps:$4 sm:$0xff]   ;;  %v4878_v6 = vld [vmem:[%s7017_s8 + $0x124] ss:$8 sps:$4 sm:$0xff]  }
  0xb1   : > { %2225 = vmatpush1.bf16.msra.mxu1 %v4833_v7  ;;  %v4881_v7 = vld [vmem:[%s7017_s8 + $0x324] ss:$8 sps:$4 sm:$0xff]  }
  0xb2   : > { %2371 = vmatpush1.bf16.msra.mxu0 %v4834_v8  ;;  %2226 = vmatprep.subr.bf16.mxu1 %v4835_v13  ;;  %v4876_v8 = vld [vmem:[%s7017_s8 + $0x120] ss:$8 sps:$4 sm:$0xff]   ;;  %v863_v13 = vld [vmem:[%s5630_s24 + $0x14] sm:$0x1] }
  0xb3   : > { %2372 = vmatprep.subr.bf16.mxu0 %v4837_v16  ;;  %v5907_v16 = vld [vmem:[%s5630_s24 + $0x18] sm:$0xf] }
  0xb4   : > { %v5917_v21 = vcombine.low %v5907_v16, %v865_v18  ;;  %v4214_v58 = vcombine.low %v5897_v12, %v5907_v16 }
  0xb5   : > { %2227 = vmatpush1.bf16.msra.mxu1 %v4839_v19  ;;  %v5911_v19 = vcombine.low %v5897_v12, %v863_v13  ;;  %v4903_v13 = vld [vmem:[%s7017_s8 + $0x360] ss:$8 sps:$4 sm:$0xff]  }
  0xb6   : > { %2373 = vmatpush1.bf16.msra.mxu0 %v4840_v20  ;;  %2228 = vmatprep.subr.bf16.mxu1 %v4841_v30  ;;  %v5914_v20 = vld [vmem:[%s5632_s30 + $0x10] sm:$0xf]  ;;  %v4192_v30 = vcombine.low %v5921_v23, %v881_v24  ;;  %v968_v32 = vshrl.u32 %v5917_v21, 16  ;;  %v970_v33 = vshll.u32 %v5917_v21, 16 }
  0xb7   : > { %2374 = vmatprep.subr.bf16.mxu0 %v4843_v31  ;;  %v961_v27 = vshrl.u32 %v5911_v19, 16  ;;  %v963_v28 = vshll.u32 %v5911_v19, 16  ;;  %v4191_v29 = vcombine.low %v5914_v20, %v879_v22  ;;  %v4893_v31 = vld [vmem:[%s7017_s8 + $0x344] ss:$8 sps:$4 sm:$0xff]   ;;  %v4908_v22 = vld [vmem:[%s7017_s8 + $0x174] ss:$8 sps:$4 sm:$0xff]  }
  0xb8   : > { %v1109_v38 = vrot.slane %v4192_v30, 1  ;;  %v972_v41 = vrot.slane %v970_v33, 1  ;;  %v4909_v33 = vld [vmem:[%s7017_s8 + $0x370] ss:$8 sps:$4 sm:$0xff]  }
  0xb9   : > { %2229 = vmatpush1.bf16.msra.mxu1 %v4845_v40  ;;  %v965_v35 = vrot.slane %v963_v28, 1  ;;  %v1108_v37 = vrot.slane %v4191_v29, 1  ;;  %v1065_v39 = vshrl.u32 %v4191_v29, 16  ;;  %v4891_v40 = vld [vmem:[%s7017_s8 + $0x340] ss:$8 sps:$4 sm:$0xff]   ;;  %v1067_v42 = vshll.u32 %v4191_v29, 16 }
  0xba   : > { %2375 = vmatpush1.bf16.msra.mxu0 %v4846_v43  ;;  %2230 = vmatprep.subr.bf16.mxu1 %v4847_v44  ;;  %v1072_v43 = vshrl.u32 %v4192_v30, 16  ;;  %v1074_v44 = vshll.u32 %v4192_v30, 16 }
  0xbb   : > { %2376 = vmatprep.subr.bf16.mxu0 %v4849_v47  ;;  %v966_v46 = vor.u32 %v965_v35, %v961_v27  ;;  %v4219_v47 = vcombine.low %v1108_v37, %v1109_v38  ;;  %v1069_v50 = vrot.slane %v1067_v42, 1  ;;  %v4911_v27 = vld [vmem:[%s7017_s8 + $0x374] ss:$8 sps:$4 sm:$0xff]   ;;  %v4914_v37 = vld [vmem:[%s7017_s8 + $0x184] ss:$8 sps:$4 sm:$0xff]  }
  0xbc   : > { %v1076_v51 = vrot.slane %v1074_v44, 1  ;;  %v4917_v42 = vld [vmem:[%s7017_s8 + $0x384] ss:$8 sps:$4 sm:$0xff]   ;;  %v6017_v44 = vld [vmem:[%s5630_s24 + $0x30] sm:$0xf] }
  0xbd   : > { %2231 = vmatpush1.bf16.msra.mxu1 %v4851_v48  ;;  %v4899_v48 = vld [vmem:[%s7017_s8 + $0x354] ss:$8 sps:$4 sm:$0xff]   ;;  %v1070_v59 = vor.u32 %v1069_v50, %v1065_v39  ;;  %v6028_v50 = vld [vmem:[%s5632_s30 + $0x30] sm:$0xf] }
  0xbe   : > { %2377 = vmatpush1.bf16.msra.mxu0 %v4852_v49  ;;  %2232 = vmatprep.subr.bf16.mxu1 %v4853_v54  ;;  %v973_v49 = vor.u32 %v972_v41, %v968_v32  ;;  %v5955_v54 = vld [vmem:[%s5630_s24 + $0x20] sm:$0xf] }
  0xbf   : > { %2378 = vmatprep.subr.bf16.mxu0 %v4855_v55  ;;  %v4902_v55 = vld [vmem:[%s7017_s8 + $0x164] ss:$8 sps:$4 sm:$0xff]   ;;  %v4906_v32 = vld [vmem:[%s7017_s8 + $0x170] ss:$8 sps:$4 sm:$0xff]  }
  0xc1   : > { %2233 = vmatpush1.bf16.msra.mxu1 %v4857_v56  ;;  %v4905_v56 = vld [vmem:[%s7017_s8 + $0x364] ss:$8 sps:$4 sm:$0xff]  }
  0xc2   : > { %2379 = vmatpush1.bf16.msra.mxu0 %v4858_v57  ;;  %2275 = vmatprep.subr.bf16.mxu1 %v4863_v60  ;;  %v4215_v57 = vcombine.low %v966_v46, %v973_v49  ;;  %v1077_v60 = vor.u32 %v1076_v51, %v1072_v43  ;;  %v4912_v51 = vld [vmem:[%s7017_s8 + $0x180] ss:$8 sps:$4 sm:$0xff]  }
  0xc3   : > { %2421 = vmatprep.subr.bf16.mxu0 %v4868_v61  ;;  %v867_v61 = vld [vmem:[%s5630_s24 + $0x24] sm:$0x1] }
  0xc4   : > { %2235 = vmatmul.mubr.bf16.vlgmr.msra.gmra.mrb[0].mxu1 %v4205_v0  ;;  %v5971_v0 = vcombine.low %v5955_v54, %v867_v61  ;;  %v4920_v61 = vld [vmem:[%s7017_s8 + $0x194] ss:$8 sps:$4 sm:$0xff]  }
  0xc5   : > { %2381 = vmatmul.mubr.bf16.vlgmr.msra.gmra.mrb[0].mxu0 %v4209_v1  ;;  %2276 = vmatpush1.bf16.msra.mxu1 %v4861_v62  ;;  %v5967_v62 = vld [vmem:[%s5630_s24 + $0x28] sm:$0xf] }
  0xc6   : > { %2422 = vmatpush1.bf16.msra.mxu0 %v4866_v63  ;;  %2277 = vmatprep.subr.bf16.mxu1 %v4872_v2  ;;  %v869_v63 = vld [vmem:[%s5630_s24 + $0x2c] sm:$0x1]  ;;  %v5977_v2 = vld [vmem:[%s5632_s30 + $0x20] sm:$0xf]  ;;  %v4223_v39 = vcombine.low %v5955_v54, %v5967_v62  ;;  %v6038_v54 = vld [vmem:[%s5632_s30 + $0x38] sm:$0xf] }
  0xc7   : > { %2423 = vmatprep.subr.bf16.mxu0 %v4875_v3  ;;  %2390 = vmatprep.mubr.bf16.mxu0 %v4219_v47  ;;  %v5974_v1 = vcombine.low %v5967_v62, %v869_v63  ;;  %v883_v3 = vld [vmem:[%s5632_s30 + $0x24] sm:$0x1]  ;;  %v6021_v47 = vld [vmem:[%s5630_s24 + $0x38] sm:$0xf] }
  0xc8   : > { %2244 = vmatprep.mubr.bf16.mxu1 %v4215_v57 }
  0xc9   : > { %2278 = vmatpush1.bf16.msra.mxu1 %v4870_v4  ;;  %v5981_v4 = vld [vmem:[%s5632_s30 + $0x28] sm:$0xf]  ;;  %v984_v12 = vshll.u32 %v5974_v1, 16 }
  0xca   : > { %2424 = vmatpush1.bf16.msra.mxu0 %v4873_v5  ;;  %2279 = vmatprep.subr.bf16.mxu1 %v4878_v6  ;;  %v4218_v5 = vcombine.low %v1070_v59, %v1077_v60  ;;  %v885_v6 = vld [vmem:[%s5632_s30 + $0x2c] sm:$0x1] }
  0xcb   : > { %2425 = vmatprep.subr.bf16.mxu0 %v4881_v7  ;;  %v4193_v7 = vcombine.low %v5977_v2, %v883_v3 }
  0xcc   : > { %2245 = vmatmul.mubr.bf16.gmra.mrb[4].mxu1 %v4214_v58 }
  0xcd   : > { %2280 = vmatpush1.bf16.msra.mxu1 %v4876_v8  ;;  %v4900_v8 = vld [vmem:[%s7017_s8 + $0x160] ss:$8 sps:$4 sm:$0xff]   ;;  %2391 = vmatmul.mubr.bf16.gmra.mrb[4].mxu0 %v4218_v5  ;;  %v1079_v16 = vshrl.u32 %v4193_v7, 16  ;;  %v1081_v18 = vshll.u32 %v4193_v7, 16  ;;  %v4923_v5 = vld [vmem:[%s7017_s8 + $0x394] ss:$8 sps:$4 sm:$0xff]  }
  0xce   : > { %2426 = vmatpush1.bf16.msra.mxu0 %v4879_v9  ;;  %2281 = vmatprep.subr.bf16.mxu1 %v4884_v10  ;;  %v975_v9 = vshrl.u32 %v5971_v0, 16  ;;  %v977_v10 = vshll.u32 %v5971_v0, 16 }
  0xcf   : > { %2427 = vmatprep.subr.bf16.mxu0 %v4887_v11  ;;  %v982_v11 = vshrl.u32 %v5974_v1, 16  ;;  %v1083_v29 = vrot.slane %v1081_v18, 1  ;;  %v4921_v18 = vld [vmem:[%s7017_s8 + $0x390] ss:$8 sps:$4 sm:$0xff]  }
  0xd0   : > { %v979_v24 = vrot.slane %v977_v10, 1 }
  0xd1   : > { %2282 = vmatpush1.bf16.msra.mxu1 %v4882_v14  ;;  %v4194_v14 = vcombine.low %v5981_v4, %v885_v6 }
  0xd2   : > { %2428 = vmatpush1.bf16.msra.mxu0 %v4885_v15  ;;  %2283 = vmatprep.subr.bf16.mxu1 %v4890_v26  ;;  %v1110_v15 = vrot.slane %v4193_v7, 1  ;;  %v986_v26 = vrot.slane %v984_v12, 1 }
  0xd3   : > { %2429 = vmatprep.subr.bf16.mxu0 %v4893_v31  ;;  %v1111_v28 = vrot.slane %v4194_v14, 1  ;;  %v1086_v30 = vshrl.u32 %v4194_v14, 16  ;;  %v1088_v31 = vshll.u32 %v4194_v14, 16  ;;  %v4918_v14 = vld [vmem:[%s7017_s8 + $0x190] ss:$8 sps:$4 sm:$0xff]  }
  0xd4   : > { %v987_v35 = vor.u32 %v986_v26, %v982_v11 }
  0xd5   : > { %2284 = vmatpush1.bf16.msra.mxu1 %v4888_v34  ;;  %v980_v34 = vor.u32 %v979_v24, %v975_v9  ;;  %v4228_v38 = vcombine.low %v1110_v15, %v1111_v28  ;;  %v1090_v41 = vrot.slane %v1088_v31, 1  ;;  %v4934_v28 = vld [vmem:[%s7017_s8 + $0x3a4] ss:$8 sps:$4 sm:$0xff]   ;;  %v4929_v31 = vld [vmem:[%s7017_s8 + $0x1a0] ss:$8 sps:$4 sm:$0xff]  }
  0xd6   : > { %2430 = vmatpush1.bf16.msra.mxu0 %v4891_v40  ;;  %2285 = vmatprep.subr.bf16.mxu1 %v4896_v45  ;;  %v1084_v40 = vor.u32 %v1083_v29, %v1079_v16  ;;  %v871_v45 = vld [vmem:[%s5630_s24 + $0x34] sm:$0x1] }
  0xd7   : > { %2431 = vmatprep.subr.bf16.mxu0 %v4899_v48  ;;  %v4224_v43 = vcombine.low %v980_v34, %v987_v35  ;;  %v1091_v46 = vor.u32 %v1090_v41, %v1086_v30  ;;  %v873_v48 = vld [vmem:[%s5630_s24 + $0x3c] sm:$0x1]  ;;  %v6025_v49 = vcombine.low %v6017_v44, %v871_v45  ;;  %2400 = vmatprep.mubr.bf16.mxu0 %v4228_v38  ;;  %v6069_v30 = vld [vmem:[%s5634_s10] sm:$0xf]  ;;  %v891_v34 = vld [vmem:[%s5634_s10 + $0x4] sm:$0x1] }
  0xd8   : > { %v6076_v35 = vld [vmem:[%s5634_s10 + $0x8] sm:$0xf]  ;;  %v4932_v38 = vld [vmem:[%s7017_s8 + $0x3a0] ss:$8 sps:$4 sm:$0xff]   ;;  %v4940_v45 = vld [vmem:[%s7017_s8 + $0x3b4] ss:$8 sps:$4 sm:$0xff]  }
  0xd9   : > { %2286 = vmatpush1.bf16.msra.mxu1 %v4894_v52  ;;  %2254 = vmatprep.mubr.bf16.mxu1 %v4224_v43  ;;  %v6034_v52 = vcombine.low %v6021_v47, %v873_v48  ;;  %v4227_v57 = vcombine.low %v1084_v40, %v1091_v46  ;;  %v989_v58 = vshrl.u32 %v6025_v49, 16  ;;  %v991_v59 = vshll.u32 %v6025_v49, 16  ;;  %s7019_s24 = sld [smem:[#allocation22_spill]] }
  0xda   : > { %2432 = vmatpush1.bf16.msra.mxu0 %v4897_v53  ;;  %2287 = vmatprep.subr.bf16.mxu1 %v4902_v55  ;;  %v887_v53 = vld [vmem:[%s5632_s30 + $0x34] sm:$0x1]  ;;  %v889_v55 = vld [vmem:[%s5632_s30 + $0x3c] sm:$0x1]  ;;  %v6085_v40 = vcombine.low %v6069_v30, %v891_v34  ;;  %s7023_s30 = sld [smem:[#allocation29_spill]] (!%p4385_p10) }
  0xdb   : > { %2433 = vmatprep.subr.bf16.mxu0 %v4905_v56  ;;  %v4915_v56 = vld [vmem:[%s7017_s8 + $0x380] ss:$8 sps:$4 sm:$0xff]   ;;  %2255 = vmatmul.mubr.bf16.gmra.mrb[8].mxu1 %v4223_v39  ;;  %v4195_v60 = vcombine.low %v6028_v50, %v887_v53  ;;  %v996_v62 = vshrl.u32 %v6034_v52, 16  ;;  %v998_v63 = vshll.u32 %v6034_v52, 16  ;;  %v4196_v3 = vcombine.low %v6038_v54, %v889_v55  ;;  %v4938_v55 = vld [vmem:[%s7017_s8 + $0x3b0] ss:$8 sps:$4 sm:$0xff]  }
  0xdc   : > { %v993_v6 = vrot.slane %v991_v59, 1  ;;  %2401 = vmatmul.mubr.bf16.gmra.mrb[8].mxu0 %v4227_v57  ;;  %v4232_v39 = vcombine.low %v6017_v44, %v6021_v47  ;;  %v1155_v44 = vshrl.u32 %v6085_v40, 16  ;;  %v1157_v46 = vshll.u32 %v6085_v40, 16  ;;  %v4951_v59 = vld [vmem:[%s7017_s8 + $0x3c4] ss:$8 sps:$4 sm:$0xff]  }
  0xdd   : > { %2288 = vmatpush1.bf16.msra.mxu1 %v4900_v8  ;;  %v1112_v7 = vrot.slane %v4195_v60, 1  ;;  %v1093_v8 = vshrl.u32 %v4195_v60, 16  ;;  %v1095_v9 = vshll.u32 %v4195_v60, 16  ;;  %v1000_v10 = vrot.slane %v998_v63, 1  ;;  %v6115_v60 = vld [vmem:[%s5634_s10 + $0x10] sm:$0xf] }
  0xde   : > { %2434 = vmatpush1.bf16.msra.mxu0 %v4903_v13  ;;  %2289 = vmatprep.subr.bf16.mxu1 %v4908_v22  ;;  %v1113_v11 = vrot.slane %v4196_v3, 1  ;;  %v1100_v12 = vshrl.u32 %v4196_v3, 16  ;;  %v1102_v13 = vshll.u32 %v4196_v3, 16  ;;  %v994_v15 = vor.u32 %v993_v6, %v989_v58  ;;  %v897_v63 = vld [vmem:[%s5634_s10 + $0x1c] sm:$0x1] }
  0xdf   : > { %2435 = vmatprep.subr.bf16.mxu0 %v4911_v27  ;;  %v1097_v16 = vrot.slane %v1095_v9, 1  ;;  %v1001_v22 = vor.u32 %v1000_v10, %v996_v62  ;;  %v4931_v27 = vld [vmem:[%s7017_s8 + $0x1a4] ss:$8 sps:$4 sm:$0xff]   ;;  %v4208_v53 = vcombine.low %v5799_v17, %v5809_v25  ;;  %v1159_v57 = vrot.slane %v1157_v46, 1  ;;  %v6119_v62 = vld [vmem:[%s5634_s10 + $0x18] sm:$0xf] }
  0xe0   : > { %v4237_v24 = vcombine.low %v1112_v7, %v1113_v11  ;;  %v1104_v26 = vrot.slane %v1102_v13, 1  ;;  %v4949_v6 = vld [vmem:[%s7017_s8 + $0x3c0] ss:$8 sps:$4 sm:$0xff]   ;;  %v4954_v7 = vld [vmem:[%s7017_s8 + $0x1d4] ss:$8 sps:$4 sm:$0xff]   ;;  %v6138_v10 = vcombine.low %v6119_v62, %v897_v63 }
  0xe1   : > { %2290 = vmatpush1.bf16.msra.mxu1 %v4906_v32  ;;  %v1098_v29 = vor.u32 %v1097_v16, %v1093_v8  ;;  %v4233_v32 = vcombine.low %v994_v15, %v1001_v22  ;;  %v1160_v17 = vor.u32 %v1159_v57, %v1155_v44  ;;  %v4957_v8 = vld [vmem:[%s7017_s8 + $0x3d4] ss:$8 sps:$4 sm:$0xff]   ;;  %v4952_v11 = vld [vmem:[%s7017_s8 + $0x1d0] ss:$8 sps:$4 sm:$0xff]   ;;  %v4965_v13 = vld [vmem:[%s7017_s8 + $0x1e4] ss:$8 sps:$4 sm:$0xff]  }
  0xe2   : > { %2436 = vmatpush1.bf16.msra.mxu0 %v4909_v33  ;;  %2291 = vmatprep.subr.bf16.mxu1 %v4914_v37  ;;  %v1105_v33 = vor.u32 %v1104_v26, %v1100_v12  ;;  %v893_v37 = vld [vmem:[%s5634_s10 + $0xc] sm:$0x1]  ;;  %v4955_v12 = vld [vmem:[%s7017_s8 + $0x3d0] ss:$8 sps:$4 sm:$0xff]   ;;  %v1178_v16 = vshll.u32 %v6138_v10, 16  ;;  %v1176_v34 = vshrl.u32 %v6138_v10, 16 }
  0xe3   : > { %2437 = vmatprep.subr.bf16.mxu0 %v4917_v42  ;;  %2410 = vmatprep.mubr.bf16.mxu0 %v4237_v24  ;;  %v6088_v41 = vcombine.low %v6076_v35, %v893_v37  ;;  %v4937_v42 = vld [vmem:[%s7017_s8 + $0x1b4] ss:$8 sps:$4 sm:$0xff]   ;;  %v6159_v24 = vld [vmem:[%s5634_s10 + $0x28] sm:$0xf]  ;;  %v905_v57 = vld [vmem:[%s5634_s10 + $0x3c] sm:$0x1] }
  0xe4   : > { %v4236_v43 = vcombine.low %v1098_v29, %v1105_v33  ;;  %2264 = vmatprep.mubr.bf16.mxu1 %v4233_v32  ;;  %v899_v22 = vld [vmem:[%s5634_s10 + $0x24] sm:$0x1]  ;;  %v901_v26 = vld [vmem:[%s5634_s10 + $0x2c] sm:$0x1]  ;;  %v1180_v37 = vrot.slane %v1178_v16, 1 }
  0xe5   : > { %2292 = vmatpush1.bf16.msra.mxu1 %v4912_v51  ;;  %v1162_v47 = vshrl.u32 %v6088_v41, 16  ;;  %v1164_v48 = vshll.u32 %v6088_v41, 16  ;;  %v4935_v51 = vld [vmem:[%s7017_s8 + $0x1b0] ss:$8 sps:$4 sm:$0xff]   ;;  %v4971_v29 = vld [vmem:[%s7017_s8 + $0x1f4] ss:$8 sps:$4 sm:$0xff]  }
  0xe6   : > { %2438 = vmatpush1.bf16.msra.mxu0 %v4915_v56  ;;  %2293 = vmatprep.subr.bf16.mxu1 %v4920_v61  ;;  %v4948_v56 = vld [vmem:[%s7017_s8 + $0x1c4] ss:$8 sps:$4 sm:$0xff]   ;;  %v1181_v46 = vor.u32 %v1180_v37, %v1176_v34  ;;  %v4235_v34 = vcombine.low %v6028_v50, %v6038_v54  ;;  %v5014_v54 = vld [vmem:[%s7017_s8 + $0x474] ss:$8 sps:$4 sm:$0xff]  }
  0xe7   : > { %2439 = vmatprep.subr.bf16.mxu0 %v4923_v5  ;;  %2411 = vmatmul.mubr.bf16.gmra.mrb[12].mxu0 %v4236_v43  ;;  %v1166_v58 = vrot.slane %v1164_v48, 1  ;;  %v895_v61 = vld [vmem:[%s5634_s10 + $0x14] sm:$0x1]  ;;  %v4946_v5 = vld [vmem:[%s7017_s8 + $0x1c0] ss:$8 sps:$4 sm:$0xff]  }
  0xe8   : > { %2265 = vmatmul.mubr.bf16.gmra.mrb[12].mxu1 %v4232_v39  ;;  %v6135_v9 = vcombine.low %v6115_v60, %v895_v61  ;;  %v6180_v39 = vcombine.low %v6159_v24, %v901_v26  ;;  %v4972_v43 = vld [vmem:[%s7017_s8 + $0x3f0] ss:$8 sps:$4 sm:$0xff]  }
  0xe9   : > { %2294 = vmatpush1.bf16.msra.mxu1 %v4918_v14  ;;  %v1167_v25 = vor.u32 %v1166_v58, %v1162_v47  ;;  %2307 = vmatprep.mubr.bf16.mxu1 %v4208_v53  ;;  %v4968_v14 = vld [vmem:[%s7017_s8 + $0x3e4] ss:$8 sps:$4 sm:$0xff]   ;;  %v4211_v53 = vcombine.low %v6069_v30, %v6076_v35  ;;  %v4979_v58 = vld [vmem:[%s7017_s8 + $0x400] ss:$8 sps:$4 sm:$0xff]  }
  0xea   : > { %2440 = vmatpush1.bf16.msra.mxu0 %v4921_v18  ;;  %2295 = vmatprep.subr.bf16.mxu1 %v4931_v27  ;;  %v1171_v15 = vshll.u32 %v6135_v9, 16  ;;  %v6155_v18 = vld [vmem:[%s5634_s10 + $0x20] sm:$0xf]  ;;  %v4963_v27 = vld [vmem:[%s7017_s8 + $0x1e0] ss:$8 sps:$4 sm:$0xff]   ;;  %v1169_v32 = vshrl.u32 %v6135_v9, 16 }
  0xeb   : > { %2441 = vmatprep.subr.bf16.mxu0 %v4934_v28  ;;  %v4212_v3 = vcombine.low %v1160_v17, %v1167_v25  ;;  %v4966_v28 = vld [vmem:[%s7017_s8 + $0x3e0] ss:$8 sps:$4 sm:$0xff]   ;;  %v1192_v48 = vshll.u32 %v6180_v39, 16  ;;  %v4217_v17 = vcombine.low %v5914_v20, %v5921_v23  ;;  %v1190_v25 = vshrl.u32 %v6180_v39, 16  ;;  %v4982_v23 = vld [vmem:[%s7017_s8 + $0x410] ss:$8 sps:$4 sm:$0xff]  }
  0xec   : > { %v1173_v33 = vrot.slane %v1171_v15, 1  ;;  %v1005_v20 = vrot.slane %v5917_v21, 1  ;;  %v4226_v15 = vcombine.low %v5977_v2, %v5981_v4  ;;  %v5001_v2 = vld [vmem:[%s7017_s8 + $0x444] ss:$8 sps:$4 sm:$0xff]  }
  0xed   : > { %2296 = vmatpush1.bf16.msra.mxu1 %v4929_v31  ;;  %2453 = vmatprep.mubr.bf16.mxu0 %v4212_v3  ;;  %v4974_v31 = vld [vmem:[%s7017_s8 + $0x3f4] ss:$8 sps:$4 sm:$0xff]   ;;  %v1194_v63 = vrot.slane %v1192_v48, 1  ;;  %v5012_v48 = vld [vmem:[%s7017_s8 + $0x470] ss:$8 sps:$4 sm:$0xff]  }
  0xee   : > { %2442 = vmatpush1.bf16.msra.mxu0 %v4932_v38  ;;  %2297 = vmatprep.subr.bf16.mxu1 %v4937_v42  ;;  %v6177_v38 = vcombine.low %v6155_v18, %v899_v22  ;;  %v4969_v42 = vld [vmem:[%s7017_s8 + $0x1f0] ss:$8 sps:$4 sm:$0xff]   ;;  %v1174_v44 = vor.u32 %v1173_v33, %v1169_v32  ;;  %v5004_v33 = vld [vmem:[%s7017_s8 + $0x454] ss:$8 sps:$4 sm:$0xff]  }
  0xef   : > { %2443 = vmatprep.subr.bf16.mxu0 %v4940_v45  ;;  %v4981_v45 = vld [vmem:[%s7017_s8 + $0x404] ss:$8 sps:$4 sm:$0xff]  }
  0xf0   : > { %v1185_v47 = vshll.u32 %v6177_v38, 16  ;;  %v4221_v30 = vcombine.low %v1174_v44, %v1181_v46  ;;  %v1183_v35 = vshrl.u32 %v6177_v38, 16  ;;  %v1211_v44 = vrot.slane %v6088_v41, 1 }
  0xf1   : > { %2298 = vmatpush1.bf16.msra.mxu1 %v4935_v51  ;;  %v6194_v51 = vld [vmem:[%s5634_s10 + $0x30] sm:$0xf]  ;;  %v1214_v46 = vrot.slane %v6177_v38, 1  ;;  %v1213_v41 = vrot.slane %v6138_v10, 1 }
  0xf2   : > { %2444 = vmatpush1.bf16.msra.mxu0 %v4938_v55  ;;  %2299 = vmatprep.subr.bf16.mxu1 %v4948_v56  ;;  %v903_v55 = vld [vmem:[%s5634_s10 + $0x34] sm:$0x1]  ;;  %v6200_v56 = vld [vmem:[%s5634_s10 + $0x38] sm:$0xf]  ;;  %v1187_v61 = vrot.slane %v1185_v47, 1  ;;  %v1215_v47 = vrot.slane %v6180_v39, 1 }
  0xf3   : > { %2445 = vmatprep.subr.bf16.mxu0 %v4951_v59  ;;  %v4984_v59 = vld [vmem:[%s7017_s8 + $0x414] ss:$8 sps:$4 sm:$0xff]   ;;  %v6214_v3 = vcombine.low %v6194_v51, %v903_v55  ;;  %s7018_s10 = sld [smem:[#allocation21_spill]] }
  0xf4   : > { %v4231_v55 = vcombine.low %v1214_v46, %v1215_v47 }
  0xf5   : > { %2300 = vmatpush1.bf16.msra.mxu1 %v4946_v5  ;;  %v6217_v5 = vcombine.low %v6200_v56, %v905_v57  ;;  %v1197_v16 = vshrl.u32 %v6214_v3, 16  ;;  %v1216_v38 = vrot.slane %v6214_v3, 1 }
  0xf6   : > { %2446 = vmatpush1.bf16.msra.mxu0 %v4949_v6  ;;  %2301 = vmatprep.subr.bf16.mxu1 %v4954_v7  ;;  %v1004_v6 = vrot.slane %v5911_v19, 1  ;;  %v4991_v7 = vld [vmem:[%s7017_s8 + $0x424] ss:$8 sps:$4 sm:$0xff]   ;;  %v1199_v19 = vshll.u32 %v6214_v3, 16 }
  0xf7   : > { %2447 = vmatprep.subr.bf16.mxu0 %v4957_v8  ;;  %v1195_v8 = vor.u32 %v1194_v63, %v1190_v25  ;;  %v1206_v21 = vshll.u32 %v6217_v5, 16  ;;  %v1217_v39 = vrot.slane %v6217_v5, 1 }
  0xf8   : > { %v1201_v26 = vrot.slane %v1199_v19, 1 }
  0xf9   : > { %2302 = vmatpush1.bf16.msra.mxu1 %v4952_v11  ;;  %v4216_v11 = vcombine.low %v1004_v6, %v1005_v20  ;;  %v4240_v57 = vcombine.low %v1216_v38, %v1217_v39 }
  0xfa   : > { %2448 = vmatpush1.bf16.msra.mxu0 %v4955_v12  ;;  %2303 = vmatprep.subr.bf16.mxu1 %v4965_v13  ;;  %v4220_v12 = vcombine.low %v6115_v60, %v6119_v62  ;;  %v4989_v13 = vld [vmem:[%s7017_s8 + $0x420] ss:$8 sps:$4 sm:$0xff]   ;;  %v1204_v60 = vshrl.u32 %v6217_v5, 16  ;;  %v1208_v62 = vrot.slane %v1206_v21, 1  ;;  %v1202_v4 = vor.u32 %v1201_v26, %v1197_v16 }
  0xfb   : > { %2449 = vmatprep.subr.bf16.mxu0 %v4968_v14  ;;  %v4994_v14 = vld [vmem:[%s7017_s8 + $0x434] ss:$8 sps:$4 sm:$0xff]   ;;  %v2569_v21 = vlaneseq }
  0xfd   : > { %2304 = vmatpush1.bf16.msra.mxu1 %v4963_v27  ;;  %v1006_v27 = vrot.slane %v5971_v0, 1  ;;  %v4229_v0 = vcombine.low %v6155_v18, %v6159_v24  ;;  %v1008_v18 = vrot.slane %v6025_v49, 1  ;;  %v1009_v24 = vrot.slane %v6034_v52, 1  ;;  %v5009_v52 = vld [vmem:[%s7017_s8 + $0x460] ss:$8 sps:$4 sm:$0xff]  }
  0xfe   : > { %2450 = vmatpush1.bf16.msra.mxu0 %v4966_v28  ;;  %2305 = vmatprep.subr.bf16.mxu1 %v4971_v29  ;;  %v1007_v28 = vrot.slane %v5974_v1, 1  ;;  %v4992_v29 = vld [vmem:[%s7017_s8 + $0x430] ss:$8 sps:$4 sm:$0xff]   ;;  %v4999_v1 = vld [vmem:[%s7017_s8 + $0x440] ss:$8 sps:$4 sm:$0xff]   ;;  %v4238_v49 = vcombine.low %v6194_v51, %v6200_v56  ;;  %v5372_v51 = vmov 0  }
  0xff   : > { %2451 = vmatprep.subr.bf16.mxu0 %v4974_v31  ;;  %v1209_v31 = vor.u32 %v1208_v62, %v1204_v60  ;;  %v4234_v50 = vcombine.low %v1008_v18, %v1009_v24 }
 0x100   : > { %v4225_v32 = vcombine.low %v1006_v27, %v1007_v28 }
 0x101   : > { %2306 = vmatpush1.bf16.msra.mxu1 %v4969_v42  ;;  %v4239_v37 = vcombine.low %v1202_v4, %v1209_v31  ;;  %v5002_v42 = vld [vmem:[%s7017_s8 + $0x450] ss:$8 sps:$4 sm:$0xff]   ;;  %v2567_v31 = vld [vmem:[%s7018_s10] sm:$0x3]  ;;  %s7028_s10 = scalar_lea.vmem (!%p4385_p10), [#allocation7], %s5628_s9 }
 0x102   : > { %2452 = vmatpush1.bf16.msra.mxu0 %v4972_v43  ;;  %4557 = vmatprep.subr.bf16.mxu1 %v4981_v45  ;;  %v5011_v43 = vld [vmem:[%s7017_s8 + $0x464] ss:$8 sps:$4 sm:$0xff]  }
 0x103   : > { %2494 = vmatprep.subr.bf16.mxu0 %v4981_v45  ;;  %v1210_v45 = vrot.slane %v6085_v40, 1  ;;  %v1212_v40 = vrot.slane %v6135_v9, 1 }
 0x104   : > { %2308 = vmatmul.mubr.bf16.vlgmr.msra.gmra.mrb[0].mxu1 %v5820_v36  ;;  %v1188_v36 = vor.u32 %v1187_v61, %v1183_v35 }
 0x105   : > { %2454 = vmatmul.mubr.bf16.vlgmr.msra.gmra.mrb[0].mxu0 %v4211_v53  ;;  %4565 = vmatpush1.bf16.msra.mxu1 %v4979_v58  ;;  %v4213_v53 = vcombine.low %v1210_v45, %v1211_v44  ;;  %v4222_v56 = vcombine.low %v1212_v40, %v1213_v41 }
 0x106   : > { %2495 = vmatpush1.bf16.msra.mxu0 %v4979_v58  ;;  %4558 = vmatprep.subr.bf16.mxu1 %v4984_v59  ;;  %v4230_v22 = vcombine.low %v1188_v36, %v1195_v8 }
 0x107   : > { %2496 = vmatprep.subr.bf16.mxu0 %v4984_v59  ;;  %2317 = vmatprep.mubr.bf16.mxu1 %v4217_v17 }
 0x108   : > { %2463 = vmatprep.mubr.bf16.mxu0 %v4221_v30 }
 0x109   : > { %4566 = vmatpush1.bf16.msra.mxu1 %v4982_v23 }
 0x10a   : > { %2497 = vmatpush1.bf16.msra.mxu0 %v4982_v23  ;;  %4559 = vmatprep.subr.bf16.mxu1 %v4991_v7 }
 0x10b   : > { %2498 = vmatprep.subr.bf16.mxu0 %v4991_v7 }
 0x10c   : > { %2318 = vmatmul.mubr.bf16.gmra.mrb[4].mxu1 %v4216_v11 }
 0x10d   : > { %2464 = vmatmul.mubr.bf16.gmra.mrb[4].mxu0 %v4220_v12  ;;  %4567 = vmatpush1.bf16.msra.mxu1 %v4989_v13  ;;  %v6295_v12 = vshrl.u32 %v2569_v21, 7 }
 0x10e   : > { %2499 = vmatpush1.bf16.msra.mxu0 %v4989_v13  ;;  %4560 = vmatprep.subr.bf16.mxu1 %v4994_v14 }
 0x10f   : > { %2500 = vmatprep.subr.bf16.mxu0 %v4994_v14  ;;  %2327 = vmatprep.mubr.bf16.mxu1 %v4226_v15 }
 0x110   : > { %2473 = vmatprep.mubr.bf16.mxu0 %v4230_v22 }
 0x111   : > { %4568 = vmatpush1.bf16.msra.mxu1 %v4992_v29 }
 0x112   : > { %2501 = vmatpush1.bf16.msra.mxu0 %v4992_v29  ;;  %4561 = vmatprep.subr.bf16.mxu1 %v5001_v2 }
 0x113   : > { %2502 = vmatprep.subr.bf16.mxu0 %v5001_v2  ;;  %v6304_v2 = vsub.s32 0, %v6295_v12 }
 0x114   : > { %2328 = vmatmul.mubr.bf16.gmra.mrb[8].mxu1 %v4225_v32  ;;  %v6312_v32 = vsub.s32 1, %v6295_v12 }
 0x115   : > { %2474 = vmatmul.mubr.bf16.gmra.mrb[8].mxu0 %v4229_v0  ;;  %4569 = vmatpush1.bf16.msra.mxu1 %v4999_v1  ;;  %v2595_v0 = vld [vmem:[%s7019_s24] sm:$0x3] }
 0x116   : > { %2503 = vmatpush1.bf16.msra.mxu0 %v4999_v1  ;;  %4562 = vmatprep.subr.bf16.mxu1 %v5004_v33  ;;  %v6318_v1 = vrot.slane %v2567_v31, %v6304_v2  ;;  %v6324_v24 = vrot.slane %v2595_v0, %v6304_v2 }
 0x117   : > { %2504 = vmatprep.subr.bf16.mxu0 %v5004_v33  ;;  %2337 = vmatprep.mubr.bf16.mxu1 %v4235_v34 }
 0x118   : > { %2483 = vmatprep.mubr.bf16.mxu0 %v4239_v37  ;;  %v6321_v37 = vrot.slane %v2567_v31, %v6312_v32 }
 0x119   : > { %4570 = vmatpush1.bf16.msra.mxu1 %v5002_v42 }
 0x11a   : > { %2505 = vmatpush1.bf16.msra.mxu0 %v5002_v42  ;;  %4563 = vmatprep.subr.bf16.mxu1 %v5011_v43 }
 0x11b   : > { %2506 = vmatprep.subr.bf16.mxu0 %v5011_v43 }
 0x11c   : > { %2338 = vmatmul.mubr.bf16.gmra.mrb[12].mxu1 %v4234_v50 }
 0x11d   : > { %2484 = vmatmul.mubr.bf16.gmra.mrb[12].mxu0 %v4238_v49  ;;  %4571 = vmatpush1.bf16.msra.mxu1 %v5009_v52 }
 0x11e   : > { %2507 = vmatpush1.bf16.msra.mxu0 %v5009_v52  ;;  %4564 = vmatprep.subr.bf16.mxu1 %v5014_v54  ;;  %v6327_v52 = vrot.slane %v2595_v0, %v6312_v32 }
 0x11f   : > { %2508 = vmatprep.subr.bf16.mxu0 %v5014_v54  ;;  %2526 = vmatprep.mubr.bf16.mxu0 %v5372_v51 }
 0x120   : > { %2546 = vmatprep.mubr.bf16.mxu1 %v5372_v51 }
 0x121   : > { %4572 = vmatpush1.bf16.msra.mxu1 %v5012_v48 }
 0x122   : > { %2509 = vmatpush1.bf16.msra.mxu0 %v5012_v48 }
 0x124   : > { %2547 = vmatmul.mubr.bf16.vlgmr.msra.gmra.mrb[16].mxu1 %v4231_v55 }
 0x125   : > { %2527 = vmatmul.mubr.bf16.vlgmr.msra.gmra.mrb[0].mxu0 %v4213_v53  ;;  %2556 = vmatprep.mubr.bf16.mxu1 %v5372_v51 }
 0x126   : > { %2536 = vmatprep.mubr.bf16.mxu0 %v5372_v51 }
 0x12c   : > { %2557 = vmatmul.mubr.bf16.gmra.mrb[20].mxu1 %v4240_v57 }
 0x12d   : > { %2537 = vmatmul.mubr.bf16.gmra.mrb[4].mxu0 %v4222_v56 }
 0x1d7   : > { %v2309_v58 = vpop.f32.mrb[0].mxu1 }
 0x1d8   : > { %v2311_v59 = vpop.f32.mrb[1].mxu1 }
 0x1d9   : > { %v2313_v17 = vpop.f32.mrb[2].mxu1 }
 0x1da   : > { %v2315_v30 = vpop.f32.mrb[3].mxu1 }
 0x1df   : > { %v6287_v35 = vpop.f32.mrb[4].mxu1 }
 0x1e0   : > { %v6289_v25 = vpop.f32.mrb[5].mxu1 }
 0x1e1   : > { %v6291_v9 = vpop.f32.mrb[6].mxu1 }
 0x1e2   : > { %v6293_v10 = vpop.f32.mrb[7].mxu1 }
 0x1e7   : > { %v2329_v61 = vpop.f32.mrb[8].mxu1 }
 0x1e8   : > { %v2475_v63 = vpop.f32.mrb[8].mxu0  ;;  %v2331_v5 = vpop.f32.mrb[9].mxu1 }
 0x1e9   : > { %v4581_v3 = vadd.f32 %v2475_v63, %v2329_v61  ;;  %v2477_v6 = vpop.f32.mrb[9].mxu0  ;;  %v2333_v23 = vpop.f32.mrb[10].mxu1 }
 0x1ea   : > { %v4583_v20 = vadd.f32 %v2477_v6, %v2331_v5  ;;  %v2479_v7 = vpop.f32.mrb[10].mxu0  ;;  %v2335_v8 = vpop.f32.mrb[11].mxu1 }
 0x1eb   : > { %v4585_v36 = vadd.f32 %v2479_v7, %v2333_v23  ;;  %v2481_v19 = vpop.f32.mrb[11].mxu0 }
 0x1ec   : > { %v4587_v11 = vadd.f32 %v2481_v19, %v2335_v8 }
 0x1ef   : > { %v2339_v13 = vpop.f32.mrb[12].mxu1 }
 0x1f0   : > { %v2485_v14 = vpop.f32.mrb[12].mxu0  ;;  %v2341_v16 = vpop.f32.mrb[13].mxu1 }
 0x1f1   : > { %v6297_v15 = vadd.f32 %v2485_v14, %v2339_v13  ;;  %v2487_v22 = vpop.f32.mrb[13].mxu0  ;;  %v2343_v60 = vpop.f32.mrb[14].mxu1 }
 0x1f2   : > { %v6299_v26 = vadd.f32 %v2487_v22, %v2341_v16  ;;  %v2489_v62 = vpop.f32.mrb[14].mxu0  ;;  %v2345_v28 = vpop.f32.mrb[15].mxu1 }
 0x1f3   : > { %v6301_v27 = vadd.f32 %v2489_v62, %v2343_v60  ;;  %v2491_v29 = vpop.f32.mrb[15].mxu0 }
 0x1f4   : > { %v6306_v4 = vadd.f32 %v2491_v29, %v2345_v28 }
 0x1f7   : > { %v2548_v34 = vpop.f32.mrb[16].mxu1 }
 0x1f8   : > { %v2528_v33 = vpop.f32.mrb[0].mxu0  ;;  %v4582_v42 = vadd.f32 %v4581_v3, %v2548_v34  ;;  %v2550_v50 = vpop.f32.mrb[17].mxu1 }
 0x1f9   : > { %v4573_v18 = vadd.f32 %v2528_v33, %v2309_v58  ;;  %v2530_v43 = vpop.f32.mrb[1].mxu0  ;;  %v4584_v54 = vadd.f32 %v4583_v20, %v2550_v50  ;;  %v2552_v44 = vpop.f32.mrb[18].mxu1 }
 0x1fa   : > { %v4574_v49 = vadd.f32 %v2530_v43, %v2311_v59  ;;  %v2532_v45 = vpop.f32.mrb[2].mxu0  ;;  %v2587_v47 = vmul.f32 %v4582_v42, %v6318_v1  ;;  %v4586_v51 = vadd.f32 %v4585_v36, %v2552_v44  ;;  %v2554_v55 = vpop.f32.mrb[19].mxu1 }
 0x1fb   : > { %v2579_v46 = vmul.f32 %v4573_v18, %v6318_v1  ;;  %v4575_v48 = vadd.f32 %v2532_v45, %v2313_v17  ;;  %v2534_v53 = vpop.f32.mrb[3].mxu0  ;;  %v2588_v41 = vmul.f32 %v4584_v54, %v6321_v37  ;;  %v4588_v39 = vadd.f32 %v4587_v11, %v2554_v55 }
 0x1fc   : > { %v2580_v40 = vmul.f32 %v4574_v49, %v6321_v37  ;;  %v4576_v38 = vadd.f32 %v2534_v53, %v2315_v30  ;;  %v2615_v57 = vadd.f32 %v6324_v24, %v2587_v47  ;;  %v2589_v59 = vmul.f32 %v4586_v51, %v6318_v1 }
 0x1fd   : > { %v2607_v56 = vadd.f32 %v6324_v24, %v2579_v46  ;;  %v2581_v58 = vmul.f32 %v4575_v48, %v6318_v1  ;;  %v2616_v17 = vadd.f32 %v6327_v52, %v2588_v41  ;;  %v2590_v3 = vmul.f32 %v4588_v39, %v6321_v37 }
 0x1fe   : > { %v2608_v61 = vadd.f32 %v6327_v52, %v2580_v40  ;;  %v2582_v63 = vmul.f32 %v4576_v38, %v6321_v37  ;;  %v2631_v6 = vmax.f32 %v2615_v57, 0.0  ;;  %v2617_v20 = vadd.f32 %v6324_v24, %v2589_v59 }
 0x1ff   : > { %v2623_v5 = vmax.f32 %v2607_v56, 0.0  ;;  %v2609_v30 = vadd.f32 %v6324_v24, %v2581_v58  ;;  %v2632_v7 = vmax.f32 %v2616_v17, 0.0  ;;  %v2618_v8 = vadd.f32 %v6327_v52, %v2590_v3  ;;  %v2558_v21 = vpop.f32.mrb[20].mxu1 }
 0x200   : > { %v2624_v23 = vmax.f32 %v2608_v61, 0.0  ;;  %v2610_v36 = vadd.f32 %v6327_v52, %v2582_v63  ;;  %v2538_v19 = vpop.f32.mrb[4].mxu0  ;;  %v2689_v13 = vrot.slane %v2631_v6, 4  ;;  %v2633_v16 = vmax.f32 %v2617_v20, 0.0  ;;  %v2560_v60 = vpop.f32.mrb[21].mxu1 }
 0x201   : > { %v2641_v11 = vrot.slane %v2623_v5, 4  ;;  %v2625_v14 = vmax.f32 %v2609_v30, 0.0  ;;  %v2540_v22 = vpop.f32.mrb[5].mxu0  ;;  %v2695_v28 = vrot.slane %v2632_v7, 4  ;;  %v2634_v31 = vmax.f32 %v2618_v8, 0.0  ;;  %v2562_v33 = vpop.f32.mrb[22].mxu1 }
 0x202   : > { %v2647_v62 = vrot.slane %v2624_v23, 4  ;;  %v2626_v29 = vmax.f32 %v2610_v36, 0.0  ;;  %v2542_v0 = vpop.f32.mrb[6].mxu0  ;;  %v2690_v18 = vadd.f32 %v2689_v13, %v2631_v6  ;;  %v2701_v43 = vrot.slane %v2633_v16, 4  ;;  %v2564_v49 = vpop.f32.mrb[23].mxu1 }
 0x203   : > { %v2642_v34 = vadd.f32 %v2641_v11, %v2623_v5  ;;  %v2653_v42 = vrot.slane %v2625_v14, 4  ;;  %v2544_v50 = vpop.f32.mrb[7].mxu0  ;;  %v2696_v45 = vadd.f32 %v2695_v28, %v2632_v7  ;;  %v2707_v46 = vrot.slane %v2634_v31, 4 }
 0x204   : > { %v2648_v54 = vadd.f32 %v2647_v62, %v2624_v23  ;;  %v2659_v44 = vrot.slane %v2626_v29, 4  ;;  %v2691_v48 = vrot.slane %v2690_v18, 2  ;;  %v2702_v53 = vadd.f32 %v2701_v43, %v2633_v16 }
 0x205   : > { %v2643_v47 = vrot.slane %v2642_v34, 2  ;;  %v2654_v51 = vadd.f32 %v2653_v42, %v2625_v14  ;;  %v2697_v38 = vrot.slane %v2696_v45, 2  ;;  %v6345_v56 = vadd.f32 %v2707_v46, %v2634_v31 }
 0x206   : > { %v2649_v55 = vrot.slane %v2648_v54, 2  ;;  %v2660_v40 = vadd.f32 %v2659_v44, %v2626_v29  ;;  %v6347_v57 = vadd.f32 %v2691_v48, %v2690_v18  ;;  %v2703_v59 = vrot.slane %v2702_v53, 2 }
 0x207   : > { %v2644_v41 = vadd.f32 %v2643_v47, %v2642_v34  ;;  %v2655_v39 = vrot.slane %v2654_v51, 2  ;;  %v6349_v6 = vadd.f32 %v2697_v38, %v2696_v45  ;;  %v2709_v36 = vrot.slane %v6345_v56, 2 }
 0x208   : > { %v2650_v58 = vadd.f32 %v2649_v55, %v2648_v54  ;;  %v2661_v61 = vrot.slane %v2660_v40, 2  ;;  %v2693_v20 = vrot.slane %v6347_v57, 1  ;;  %v6352_v23 = vadd.f32 %v2703_v59, %v2702_v53 }
 0x209   : > { %v2645_v17 = vrot.slane %v2644_v41, 1  ;;  %v2656_v63 = vadd.f32 %v2655_v39, %v2654_v51  ;;  %v4577_v13 = vadd.f32 %v2538_v19, %v6287_v35  ;;  %v4590_v14 = vadd.f32 %v6297_v15, %v2558_v21 }
 0x20a   : > { %v2651_v3 = vrot.slane %v2650_v58, 1  ;;  %v2662_v5 = vadd.f32 %v2661_v61, %v2660_v40  ;;  %v4578_v28 = vadd.f32 %v2540_v22, %v6289_v25  ;;  %v4592_v29 = vadd.f32 %v6299_v26, %v2560_v60 }
 0x20b   : > { %v2657_v30 = vrot.slane %v2656_v63, 1  ;;  %v2646_v8 = vadd.f32 %v2645_v17, %v2644_v41  ;;  %v2583_v34 = vmul.f32 %v4577_v13, %v6318_v1  ;;  %v2591_v18 = vmul.f32 %v4590_v14, %v6318_v1 }
 0x20c   : > { %v2663_v7 = vrot.slane %v2662_v5, 1  ;;  %v2652_v16 = vadd.f32 %v2651_v3, %v2650_v58  ;;  %v4579_v42 = vadd.f32 %v2542_v0, %v6291_v9  ;;  %v2584_v35 = vmul.f32 %v4578_v28, %v6321_v37 }
 0x20d   : > { %v2658_v11 = vadd.f32 %v2657_v30, %v2656_v63  ;;  %v2592_v15 = vmul.f32 %v4592_v29, %v6321_v37  ;;  %v4594_v25 = vadd.f32 %v6301_v27, %v2562_v33  ;;  %v2611_v26 = vadd.f32 %v6324_v24, %v2583_v34 }
 0x20e   : > { %v2664_v62 = vadd.f32 %v2663_v7, %v2662_v5  ;;  %v2619_v19 = vadd.f32 %v6324_v24, %v2591_v18  ;;  %v2585_v21 = vmul.f32 %v4579_v42, %v6318_v1  ;;  %v4580_v22 = vadd.f32 %v2544_v50, %v6293_v10 }
 0x20f   : > { %v6360_v31 = vsel %vm2753_vm0, %v2658_v11, %v2646_v8  ;;  %v2612_v60 = vadd.f32 %v6327_v52, %v2584_v35  ;;  %v2620_v9 = vadd.f32 %v6327_v52, %v2592_v15  ;;  %v2593_v0 = vmul.f32 %v4594_v25, %v6318_v1 }
 0x210   : > { %v6366_v43 = vsel %vm2753_vm0, %v2664_v62, %v2652_v16  ;;  %v4596_v54 = vadd.f32 %v6306_v4, %v2564_v49  ;;  %v2627_v45 = vmax.f32 %v2611_v26, 0.0  ;;  %v2635_v44 = vmax.f32 %v2619_v19, 0.0 }
 0x211   : > { %v2613_v27 = vadd.f32 %v6324_v24, %v2585_v21  ;;  %v2586_v33 = vmul.f32 %v4580_v22, %v6321_v37  ;;  %v2628_v46 = vmax.f32 %v2612_v60, 0.0  ;;  %v2636_v47 = vmax.f32 %v2620_v9, 0.0 }
 0x212   : > { %v2621_v48 = vadd.f32 %v6324_v24, %v2593_v0  ;;  %v2594_v10 = vmul.f32 %v4596_v54, %v6321_v37  ;;  %v2665_v50 = vrot.slane %v2627_v45, 4  ;;  %v2713_v51 = vrot.slane %v2635_v44, 4 }
 0x213   : > { %v2629_v53 = vmax.f32 %v2613_v27, 0.0  ;;  %v2614_v55 = vadd.f32 %v6327_v52, %v2586_v33  ;;  %v2671_v1 = vrot.slane %v2628_v46, 4  ;;  %v2719_v4 = vrot.slane %v2636_v47, 4 }
 0x214   : > { %v2637_v49 = vmax.f32 %v2621_v48, 0.0  ;;  %v2622_v40 = vadd.f32 %v6327_v52, %v2594_v10  ;;  %v2666_v41 = vadd.f32 %v2665_v50, %v2627_v45  ;;  %v2714_v38 = vadd.f32 %v2713_v51, %v2635_v44 }
 0x215   : > { %v2677_v39 = vrot.slane %v2629_v53, 4  ;;  %v2630_v58 = vmax.f32 %v2614_v55, 0.0  ;;  %v2672_v59 = vadd.f32 %v2671_v1, %v2628_v46  ;;  %v2720_v61 = vadd.f32 %v2719_v4, %v2636_v47 }
 0x216   : > { %v2725_v24 = vrot.slane %v2637_v49, 4  ;;  %v2638_v37 = vmax.f32 %v2622_v40, 0.0  ;;  %v2667_v17 = vrot.slane %v2666_v41, 2  ;;  %v2715_v63 = vrot.slane %v2714_v38, 2  ;;  %v2639_v40 = vld [vmem:[#allocation2] sm:$0xff] }
 0x217   : > { %v2678_v3 = vadd.f32 %v2677_v39, %v2629_v53  ;;  %v2683_v5 = vrot.slane %v2630_v58, 4  ;;  %v2673_v30 = vrot.slane %v2672_v59, 2  ;;  %v2721_v7 = vrot.slane %v2720_v61, 2 }
 0x218   : > { %v2726_v8 = vadd.f32 %v2725_v24, %v2637_v49  ;;  %v2731_v11 = vrot.slane %v2638_v37, 4  ;;  %v2710_v52 = vadd.f32 %v2709_v36, %v6345_v56  ;;  %v2668_v13 = vadd.f32 %v2667_v17, %v2666_v41 }
 0x219   : > { %v2679_v14 = vrot.slane %v2678_v3, 2  ;;  %v2684_v16 = vadd.f32 %v2683_v5, %v2630_v58  ;;  %v2716_v62 = vadd.f32 %v2715_v63, %v2714_v38  ;;  %v2674_v28 = vadd.f32 %v2673_v30, %v2672_v59  ;;  %v2640_v58 = vld [vmem:[#allocation2 + $0x8] sm:$0xff]  ;;  %v5015_v63 = vld [vmem:[%s7021_s4 + $0x4] ss:$16 sps:$4 sm:$0xff] (!%p4385_p10)   ;;  %v5020_v30 = vld [vmem:[%s7021_s4 + $0x20] ss:$16 sps:$4 sm:$0xff] (!%p4385_p10)  }
 0x21a   : > { %v2727_v29 = vrot.slane %v2726_v8, 2  ;;  %v2732_v34 = vadd.f32 %v2731_v11, %v2638_v37  ;;  %v2699_v18 = vrot.slane %v6349_v6, 1  ;;  %v2669_v42 = vrot.slane %v2668_v13, 1  ;;  %3174 = vmatprep.subr.bf16.mxu1 (!%p4385_p10), %v5015_v63  ;;  %v5018_v5 = vld [vmem:[%s7021_s4 + $0x24] ss:$16 sps:$4 sm:$0xff] (!%p4385_p10)  }
 0x21b   : > { %v2680_v35 = vadd.f32 %v2679_v14, %v2678_v3  ;;  %v2685_v15 = vrot.slane %v2684_v16, 2  ;;  %v2675_v25 = vrot.slane %v2674_v28, 1  ;;  %v2722_v26 = vadd.f32 %v2721_v7, %v2720_v61  ;;  %v5017_v3 = vld [vmem:[%s7021_s4] ss:$16 sps:$4 sm:$0xff] (!%p4385_p10)   ;;  %v5021_v7 = vld [vmem:[%s7021_s4 + $0x44] ss:$16 sps:$4 sm:$0xff] (!%p4385_p10)  }
 0x21c   : > { %v2728_v19 = vadd.f32 %v2727_v29, %v2726_v8  ;;  %v2733_v21 = vrot.slane %v2732_v34, 2  ;;  %v2705_v22 = vrot.slane %v6352_v23, 1  ;;  %v2670_v60 = vadd.f32 %v2669_v42, %v2668_v13  ;;  %3175 = vmatpush1.bf16.msra.mxu1 (!%p4385_p10), %v5017_v3  ;;  %v5023_v8 = vld [vmem:[%s7021_s4 + $0x40] ss:$16 sps:$4 sm:$0xff] (!%p4385_p10)   ;;  %v5024_v11 = vld [vmem:[%s7021_s4 + $0x64] ss:$16 sps:$4 sm:$0xff] (!%p4385_p10)  }
 0x21d   : > { %v2681_v56 = vrot.slane %v2680_v35, 1  ;;  %v2686_v36 = vadd.f32 %v2685_v15, %v2684_v16  ;;  %v2711_v9 = vrot.slane %v2710_v52, 1  ;;  %v2717_v0 = vrot.slane %v2716_v62, 1  ;;  %3176 = vmatprep.subr.bf16.mxu1 (!%p4385_p10), %v5018_v5  ;;  %v5027_v13 = vld [vmem:[%s7021_s4 + $0x84] ss:$16 sps:$4 sm:$0xff] (!%p4385_p10)  }
 0x21e   : > { %v2676_v54 = vadd.f32 %v2675_v25, %v2674_v28  ;;  %v2734_v45 = vadd.f32 %v2733_v21, %v2732_v34  ;;  %v2756_v44 = vsel %vm2755_vm1, %v2670_v60, %v6360_v31  ;;  %v2729_v33 = vrot.slane %v2728_v19, 1  ;;  %v5029_v14 = vld [vmem:[%s7021_s4 + $0x80] ss:$16 sps:$4 sm:$0xff] (!%p4385_p10)   ;;  %v5030_v16 = vld [vmem:[%s7021_s4 + $0xa4] ss:$16 sps:$4 sm:$0xff] (!%p4385_p10)  }
 0x21f   : > { %v2682_v27 = vadd.f32 %v2681_v56, %v2680_v35  ;;  %v2687_v46 = vrot.slane %v2686_v36, 1  ;;  %v2694_v47 = vadd.f32 %v2693_v20, %v6347_v57  ;;  %v2723_v10 = vrot.slane %v2722_v26, 1  ;;  %v5033_v28 = vld [vmem:[%s7021_s4 + $0xc4] ss:$16 sps:$4 sm:$0xff] (!%p4385_p10)   ;;  %v5038_v15 = vld [vmem:[%s7021_s4 + $0xe0] ss:$16 sps:$4 sm:$0xff] (!%p4385_p10)  }
 0x220   : > { %v2768_v48 = vsel %vm2755_vm1, %v2676_v54, %v6366_v43  ;;  %v2706_v50 = vadd.f32 %v2705_v22, %v6352_v23  ;;  %v2735_v55 = vrot.slane %v2734_v45, 1  ;;  %v2700_v31 = vadd.f32 %v2699_v18, %v6349_v6  ;;  %3177 = vmatpush1.bf16.msra.mxu1 (!%p4385_p10), %v5020_v30  ;;  %v5035_v18 = vld [vmem:[%s7021_s4 + $0xc0] ss:$16 sps:$4 sm:$0xff] (!%p4385_p10)   ;;  %v5036_v42 = vld [vmem:[%s7021_s4 + $0xe4] ss:$16 sps:$4 sm:$0xff] (!%p4385_p10)  }
 0x221   : > { %v2758_v51 = vsel %vm2757_vm2, %v2682_v27, %v2756_v44  ;;  %v2688_v53 = vadd.f32 %v2687_v46, %v2686_v36  ;;  %v2718_v1 = vadd.f32 %v2717_v0, %v2716_v62  ;;  %v2712_v49 = vadd.f32 %v2711_v9, %v2710_v52  ;;  %3178 = vmatprep.subr.bf16.mxu1 (!%p4385_p10), %v5021_v7  ;;  %v5026_v52 = vld [vmem:[%s7021_s4 + $0x60] ss:$16 sps:$4 sm:$0xff] (!%p4385_p10)   ;;  %v5039_v25 = vld [vmem:[%s7021_s4 + $0x104] ss:$16 sps:$4 sm:$0xff] (!%p4385_p10)   ;;  %v5072_v3 = vld [vmem:[%s7021_s4 + $0x68] ss:$16 sps:$4 sm:$0xff] (!%p4385_p10)  }
 0x222   : > { %v2760_v4 = vsel %vm2759_vm3, %v2694_v47, %v2758_v51  ;;  %v2730_v57 = vadd.f32 %v2729_v33, %v2728_v19  ;;  %v2724_v41 = vadd.f32 %v2723_v10, %v2722_v26  ;;  %v2736_v59 = vadd.f32 %v2735_v55, %v2734_v45  ;;  %v5032_v62 = vld [vmem:[%s7021_s4 + $0xa0] ss:$16 sps:$4 sm:$0xff] (!%p4385_p10)   ;;  %v5042_v19 = vld [vmem:[%s7021_s4 + $0x124] ss:$16 sps:$4 sm:$0xff] (!%p4385_p10)   ;;  %v5077_v5 = vld [vmem:[%s7021_s4 + $0x8c] ss:$16 sps:$4 sm:$0xff] (!%p4385_p10)  }
 0x223   : > { %v2762_v20 = vsel %vm2761_vm4, %v2706_v50, %v2760_v4  ;;  %v2769_v43 = vsel %vm2757_vm2, %v2688_v53, %v2768_v48  ;;  %v5041_v26 = vld [vmem:[%s7021_s4 + $0x100] ss:$16 sps:$4 sm:$0xff] (!%p4385_p10)   ;;  %v5045_v22 = vld [vmem:[%s7021_s4 + $0x144] ss:$16 sps:$4 sm:$0xff] (!%p4385_p10)  }
 0x224   : > { %v2764_v23 = vsel %vm2763_vm5, %v2718_v1, %v2762_v20  ;;  %v2770_v38 = vsel %vm2759_vm3, %v2700_v31, %v2769_v43  ;;  %2783 = sbr.rel (%p4385_p10) target bundleno = 1355 (0x54b), region = 207  ;;  %3179 = vmatpush1.bf16.msra.mxu1 (!%p4385_p10), %v5023_v8  ;;  %v5044_v21 = vld [vmem:[%s7021_s4 + $0x120] ss:$16 sps:$4 sm:$0xff] (!%p4385_p10)   ;;  %v5048_v56 = vld [vmem:[%s7021_s4 + $0x164] ss:$16 sps:$4 sm:$0xff] (!%p4385_p10)  }
 0x225   : > { %v2766_v39 = vsel %vm2765_vm6, %v2730_v57, %v2764_v23  ;;  %v2771_v6 = vsel %vm2761_vm4, %v2712_v49, %v2770_v38  ;;  %3180 = vmatprep.subr.bf16.mxu1 (!%p4385_p10), %v5024_v11  ;;  %v5047_v60 = vld [vmem:[%s7021_s4 + $0x140] ss:$16 sps:$4 sm:$0xff] (!%p4385_p10)   ;;  %v5051_v9 = vld [vmem:[%s7021_s4 + $0x184] ss:$16 sps:$4 sm:$0xff] (!%p4385_p10)   ;;  %v5065_v57 = vld [vmem:[%s7021_s4 + $0xc] ss:$16 sps:$4 sm:$0xff] (!%p4385_p10)  }
 0x226   : > { %v2776_v61 = vadd.f32 %v2766_v39, %v2639_v40  ;;  %v2772_v24 = vsel %vm2763_vm5, %v2724_v41, %v2771_v6  ;;  %v5050_v36 = vld [vmem:[%s7021_s4 + $0x160] ss:$16 sps:$4 sm:$0xff] (!%p4385_p10)   ;;  %v5111_v0 = vld [vmem:[%s7022_s7 + $0x4] ss:$8 sps:$4 sm:$0xff] (!%p4385_p10)   ;;  %v5114_v45 = vld [vmem:[%s7022_s7 + $0x14] ss:$8 sps:$4 sm:$0xff] (!%p4385_p10)  }
 0x227   : > { %v2773_v37 = vsel %vm2765_vm6, %v2736_v59, %v2772_v24  ;;  %v5113_v54 = vld [vmem:[%s7022_s7] ss:$8 sps:$4 sm:$0xff] (!%p4385_p10)   ;;  %3700 = vmatprep.subr.bf16.mxu0 (!%p4385_p10), %v5111_v0  ;;  %v5116_v27 = vld [vmem:[%s7022_s7 + $0x10] ss:$8 sps:$4 sm:$0xff] (!%p4385_p10)   ;;  %v5054_v33 = vld [vmem:[%s7021_s4 + $0x1a4] ss:$16 sps:$4 sm:$0xff] (!%p4385_p10)  }
 0x228   : > { %2778 = vst [vmem:[#allocation2] sm:$0xff] %v2776_v61  ;;  %v2777_v17 = vadd.f32 %v2773_v37, %v2640_v58  ;;  %3181 = vmatpush1.bf16.msra.mxu1 (!%p4385_p10), %v5026_v52  ;;  %v5053_v44 = vld [vmem:[%s7021_s4 + $0x180] ss:$16 sps:$4 sm:$0xff] (!%p4385_p10)   ;;  %3701 = vmatpush1.bf16.msra.mxu0 (!%p4385_p10), %v5113_v54  ;;  %v5117_v46 = vld [vmem:[%s7022_s7 + $0x24] ss:$8 sps:$4 sm:$0xff] (!%p4385_p10)  }
 0x229   : > { %3182 = vmatprep.subr.bf16.mxu1 (!%p4385_p10), %v5027_v13  ;;  %3702 = vmatprep.subr.bf16.mxu0 (!%p4385_p10), %v5114_v45  ;;  %v5056_v47 = vld [vmem:[%s7021_s4 + $0x1a0] ss:$16 sps:$4 sm:$0xff] (!%p4385_p10)   ;;  %v5057_v10 = vld [vmem:[%s7021_s4 + $0x1c4] ss:$16 sps:$4 sm:$0xff] (!%p4385_p10)   ;;  %v5063_v43 = vld [vmem:[%s7021_s4 + $0x8] ss:$16 sps:$4 sm:$0xff] (!%p4385_p10)  }
 0x22a   : > { %2779 = vst [vmem:[#allocation2 + $0x8] sm:$0xff] %v2777_v17  ;;  %v5119_v48 = vld [vmem:[%s7022_s7 + $0x20] ss:$8 sps:$4 sm:$0xff] (!%p4385_p10)   ;;  %v5120_v50 = vld [vmem:[%s7022_s7 + $0x34] ss:$8 sps:$4 sm:$0xff] (!%p4385_p10)  }
 0x22b   : > { %v5059_v51 = vld [vmem:[%s7021_s4 + $0x1c0] ss:$16 sps:$4 sm:$0xff]   ;;  %v5060_v31 = vld [vmem:[%s7021_s4 + $0x1e4] ss:$16 sps:$4 sm:$0xff]   ;;  %v5068_v23 = vld [vmem:[%s7021_s4 + $0x2c] ss:$16 sps:$4 sm:$0xff]  }
 0x22c   : > { %3183 = vmatpush1.bf16.msra.mxu1 %v5029_v14  ;;  %3703 = vmatpush1.bf16.msra.mxu0 %v5116_v27  ;;  %v5122_v55 = vld [vmem:[%s7022_s7 + $0x30] ss:$8 sps:$4 sm:$0xff]   ;;  %v5123_v1 = vld [vmem:[%s7022_s7 + $0x44] ss:$8 sps:$4 sm:$0xff]   ;;  %v5125_v40 = vld [vmem:[%s7022_s7 + $0x40] ss:$8 sps:$4 sm:$0xff]  }
 0x22d   : > { %3184 = vmatprep.subr.bf16.mxu1 %v5030_v16  ;;  %3704 = vmatprep.subr.bf16.mxu0 %v5117_v46  ;;  %v5062_v4 = vld [vmem:[%s7021_s4 + $0x1e0] ss:$16 sps:$4 sm:$0xff]   ;;  %v5126_v20 = vld [vmem:[%s7022_s7 + $0x54] ss:$8 sps:$4 sm:$0xff]   ;;  %v5129_v39 = vld [vmem:[%s7022_s7 + $0x64] ss:$8 sps:$4 sm:$0xff]  }
 0x22e   : > { %v5128_v38 = vld [vmem:[%s7022_s7 + $0x50] ss:$8 sps:$4 sm:$0xff]   ;;  %v5071_v59 = vld [vmem:[%s7021_s4 + $0x4c] ss:$16 sps:$4 sm:$0xff]   ;;  %v5131_v6 = vld [vmem:[%s7022_s7 + $0x60] ss:$8 sps:$4 sm:$0xff]  }
 0x22f   : > { %v2784_v53 = vld [vmem:[#allocation2] sm:$0xff]  ;;  %v5066_v58 = vld [vmem:[%s7021_s4 + $0x28] ss:$16 sps:$4 sm:$0xff]   ;;  %v5132_v61 = vld [vmem:[%s7022_s7 + $0x74] ss:$8 sps:$4 sm:$0xff]  }
 0x230   : > { %3185 = vmatpush1.bf16.msra.mxu1 %v5032_v62  ;;  %3705 = vmatpush1.bf16.msra.mxu0 %v5119_v48  ;;  %v2786_v49 = vmul.f32 0.015625, %v2784_v53  ;;  %v5069_v24 = vld [vmem:[%s7021_s4 + $0x48] ss:$16 sps:$4 sm:$0xff]   ;;  %v5074_v37 = vld [vmem:[%s7021_s4 + $0x6c] ss:$16 sps:$4 sm:$0xff]  }
 0x231   : > { %v2785_v29 = vld [vmem:[#allocation2 + $0x8] sm:$0xff]  ;;  %3186 = vmatprep.subr.bf16.mxu1 %v5033_v28  ;;  %3706 = vmatprep.subr.bf16.mxu0 %v5120_v50  ;;  %v5134_v17 = vld [vmem:[%s7022_s7 + $0x70] ss:$8 sps:$4 sm:$0xff]   ;;  %v5138_v7 = vld [vmem:[%s7022_s7 + $0x94] ss:$8 sps:$4 sm:$0xff]  }
 0x232   : > { %v2787_v34 = vmul.f32 0.015625, %v2785_v29  ;;  %v6544_v41 = vpack.c.bf16 %v2786_v49, %v2786_v49  ;;  %v5135_v63 = vld [vmem:[%s7022_s7 + $0x84] ss:$8 sps:$4 sm:$0xff]   ;;  %v5137_v30 = vld [vmem:[%s7022_s7 + $0x80] ss:$8 sps:$4 sm:$0xff]  }
 0x233   : > { %v5075_v8 = vld [vmem:[%s7021_s4 + $0x88] ss:$16 sps:$4 sm:$0xff]   ;;  %v5080_v11 = vld [vmem:[%s7021_s4 + $0xac] ss:$16 sps:$4 sm:$0xff]  }
 0x234   : > { %v6451_v35 = vpack.c.bf16 %v2787_v34, %v2787_v34  ;;  %3187 = vmatpush1.bf16.msra.mxu1 %v5035_v18  ;;  %3707 = vmatpush1.bf16.msra.mxu0 %v5122_v55  ;;  %v5140_v52 = vld [vmem:[%s7022_s7 + $0x90] ss:$8 sps:$4 sm:$0xff]   ;;  %v5141_v13 = vld [vmem:[%s7022_s7 + $0xa4] ss:$8 sps:$4 sm:$0xff]   ;;  %v5143_v62 = vld [vmem:[%s7022_s7 + $0xa0] ss:$8 sps:$4 sm:$0xff]  }
 0x235   : > { %3188 = vmatprep.subr.bf16.mxu1 %v5036_v42  ;;  %3708 = vmatprep.subr.bf16.mxu0 %v5123_v1  ;;  %v5078_v14 = vld [vmem:[%s7021_s4 + $0xa8] ss:$16 sps:$4 sm:$0xff]   ;;  %v5083_v16 = vld [vmem:[%s7021_s4 + $0xcc] ss:$16 sps:$4 sm:$0xff]   ;;  %v5208_v1 = vld [vmem:[%s7023_s30] sm:$0xff]  }
 0x236   : > { %3206 = vmatprep.mubr.bf16.mxu1 %v6451_v35  ;;  %v5144_v28 = vld [vmem:[%s7022_s7 + $0xb4] ss:$8 sps:$4 sm:$0xff]   ;;  %v5081_v29 = vld [vmem:[%s7021_s4 + $0xc8] ss:$16 sps:$4 sm:$0xff]   ;;  %v5147_v42 = vld [vmem:[%s7022_s7 + $0xc4] ss:$8 sps:$4 sm:$0xff]  }
 0x237   : > { %v5086_v34 = vld [vmem:[%s7021_s4 + $0xec] ss:$16 sps:$4 sm:$0xff]   ;;  %v5146_v18 = vld [vmem:[%s7022_s7 + $0xb0] ss:$8 sps:$4 sm:$0xff]   ;;  %v5155_v50 = vld [vmem:[%s7022_s7 + $0xe0] ss:$8 sps:$4 sm:$0xff]  }
 0x238   : > { %3189 = vmatpush1.bf16.msra.mxu1 %v5038_v15  ;;  %3709 = vmatpush1.bf16.msra.mxu0 %v5125_v40  ;;  %v5089_v15 = vld [vmem:[%s7021_s4 + $0x10c] ss:$16 sps:$4 sm:$0xff]   ;;  %v5099_v54 = vld [vmem:[%s7021_s4 + $0x188] ss:$16 sps:$4 sm:$0xff]   ;;  %v5211_v40 = vld [vmem:[%s7023_s30 + $0x50] sm:$0xff]  }
 0x239   : > { %3190 = vmatprep.subr.bf16.mxu1 %v5039_v25  ;;  %3710 = vmatprep.subr.bf16.mxu0 %v5126_v20  ;;  %v5149_v25 = vld [vmem:[%s7022_s7 + $0xc0] ss:$8 sps:$4 sm:$0xff]   ;;  %v5101_v0 = vld [vmem:[%s7021_s4 + $0x18c] ss:$16 sps:$4 sm:$0xff]   ;;  %v5152_v48 = vld [vmem:[%s7022_s7 + $0xd0] ss:$8 sps:$4 sm:$0xff]  }
 0x23a   : > { %v5104_v45 = vld [vmem:[%s7021_s4 + $0x1ac] ss:$16 sps:$4 sm:$0xff]   ;;  %v5158_v53 = vld [vmem:[%s7022_s7 + $0xf0] ss:$8 sps:$4 sm:$0xff]  }
 0x23b   : > { %v5107_v27 = vld [vmem:[%s7021_s4 + $0x1cc] ss:$16 sps:$4 sm:$0xff]  }
 0x23c   : > { %3191 = vmatpush1.bf16.msra.mxu1 %v5041_v26  ;;  %3711 = vmatpush1.bf16.msra.mxu0 %v5128_v38  ;;  %v5150_v26 = vld [vmem:[%s7022_s7 + $0xd4] ss:$8 sps:$4 sm:$0xff]   ;;  %v5161_v55 = vld [vmem:[%s7022_s7 + $0x104] ss:$8 sps:$4 sm:$0xff]  }
 0x23d   : > { %3192 = vmatprep.subr.bf16.mxu1 %v5042_v19  ;;  %3712 = vmatprep.subr.bf16.mxu0 %v5129_v39  ;;  %v5087_v19 = vld [vmem:[%s7021_s4 + $0x108] ss:$16 sps:$4 sm:$0xff]   ;;  %v5110_v46 = vld [vmem:[%s7021_s4 + $0x1ec] ss:$16 sps:$4 sm:$0xff]   ;;  %v6741_v39 = vld [vmem:[%s7024_s11] sm:$0xf] }
 0x23e   : > { %v5210_v49 = vld [vmem:[%s7023_s30 + $0x8] sm:$0xff]   ;;  %v5213_v20 = vld [vmem:[%s7023_s30 + $0x58] sm:$0xff]  }
 0x23f   : > { %v5217_v38 = vld [vmem:[%s7023_s30 + $0x68] sm:$0xff]  }
 0x240   : > { %3193 = vmatpush1.bf16.msra.mxu1 %v5044_v21  ;;  %3713 = vmatpush1.bf16.msra.mxu0 %v5131_v6  ;;  %v5092_v21 = vld [vmem:[%s7021_s4 + $0x12c] ss:$16 sps:$4 sm:$0xff]   ;;  %v3265_v6 = vrot.slane %v6741_v39, %v6312_v32 }
 0x241   : > { %3194 = vmatprep.subr.bf16.mxu1 %v5045_v22  ;;  %3714 = vmatprep.subr.bf16.mxu0 %v5132_v61  ;;  %v5090_v22 = vld [vmem:[%s7021_s4 + $0x128] ss:$16 sps:$4 sm:$0xff]  }
 0x244   : > { %3195 = vmatpush1.bf16.msra.mxu1 %v5047_v60  ;;  %3715 = vmatpush1.bf16.msra.mxu0 %v5134_v17  ;;  %v5095_v60 = vld [vmem:[%s7021_s4 + $0x14c] ss:$16 sps:$4 sm:$0xff]  }
 0x245   : > { %3196 = vmatprep.subr.bf16.mxu1 %v5048_v56  ;;  %3716 = vmatprep.subr.bf16.mxu0 %v5135_v63  ;;  %v5093_v56 = vld [vmem:[%s7021_s4 + $0x148] ss:$16 sps:$4 sm:$0xff]  }
 0x248   : > { %3197 = vmatpush1.bf16.msra.mxu1 %v5050_v36  ;;  %3717 = vmatpush1.bf16.msra.mxu0 %v5137_v30  ;;  %v5098_v36 = vld [vmem:[%s7021_s4 + $0x16c] ss:$16 sps:$4 sm:$0xff]  }
 0x249   : > { %3198 = vmatprep.subr.bf16.mxu1 %v5051_v9  ;;  %3718 = vmatprep.subr.bf16.mxu0 %v5138_v7  ;;  %v5096_v9 = vld [vmem:[%s7021_s4 + $0x168] ss:$16 sps:$4 sm:$0xff]  }
 0x24c   : > { %3199 = vmatpush1.bf16.msra.mxu1 %v5053_v44  ;;  %3719 = vmatpush1.bf16.msra.mxu0 %v5140_v52  ;;  %v5102_v44 = vld [vmem:[%s7021_s4 + $0x1a8] ss:$16 sps:$4 sm:$0xff]  }
 0x24d   : > { %3200 = vmatprep.subr.bf16.mxu1 %v5054_v33  ;;  %3720 = vmatprep.subr.bf16.mxu0 %v5141_v13  ;;  %v5105_v33 = vld [vmem:[%s7021_s4 + $0x1c8] ss:$16 sps:$4 sm:$0xff]  }
 0x250   : > { %3201 = vmatpush1.bf16.msra.mxu1 %v5056_v47  ;;  %3721 = vmatpush1.bf16.msra.mxu0 %v5143_v62  ;;  %v5108_v47 = vld [vmem:[%s7021_s4 + $0x1e8] ss:$16 sps:$4 sm:$0xff]   ;;  %v5164_v62 = vld [vmem:[%s7022_s7 + $0x114] ss:$8 sps:$4 sm:$0xff]  }
 0x251   : > { %3202 = vmatprep.subr.bf16.mxu1 %v5057_v10  ;;  %3722 = vmatprep.subr.bf16.mxu0 %v5144_v28  ;;  %v5153_v10 = vld [vmem:[%s7022_s7 + $0xe4] ss:$8 sps:$4 sm:$0xff]   ;;  %v5162_v28 = vld [vmem:[%s7022_s7 + $0x110] ss:$8 sps:$4 sm:$0xff]  }
 0x254   : > { %3203 = vmatpush1.bf16.msra.mxu1 %v5059_v51  ;;  %3723 = vmatpush1.bf16.msra.mxu0 %v5146_v18  ;;  %v5156_v51 = vld [vmem:[%s7022_s7 + $0xf4] ss:$8 sps:$4 sm:$0xff]  }
 0x255   : > { %3204 = vmatprep.subr.bf16.mxu1 %v5060_v31  ;;  %3724 = vmatprep.subr.bf16.mxu0 %v5147_v42  ;;  %v5207_v31 = vld [vmem:[%s7023_s30 + $0x40] sm:$0xff]   ;;  %v5170_v18 = vld [vmem:[%s7022_s7 + $0x134] ss:$8 sps:$4 sm:$0xff]   ;;  %v5168_v42 = vld [vmem:[%s7022_s7 + $0x130] ss:$8 sps:$4 sm:$0xff]  }
 0x258   : > { %3205 = vmatpush1.bf16.msra.mxu1 %v5062_v4  ;;  %3725 = vmatpush1.bf16.msra.mxu0 %v5149_v25  ;;  %v5209_v4 = vld [vmem:[%s7023_s30 + $0x48] sm:$0xff]   ;;  %v5176_v25 = vld [vmem:[%s7022_s7 + $0x154] ss:$8 sps:$4 sm:$0xff]  }
 0x259   : > { %3215 = vmatprep.subr.bf16.mxu1 %v5065_v57  ;;  %3726 = vmatprep.subr.bf16.mxu0 %v5150_v26  ;;  %v5212_v57 = vld [vmem:[%s7023_s30 + $0x10] sm:$0xff]  }
 0x25a   : > { %v5174_v26 = vld [vmem:[%s7022_s7 + $0x150] ss:$8 sps:$4 sm:$0xff]  }
 0x25b   : > { %3207 = vmatmul.mubr.bf16.vlgmr.msra.gmra.mrb[0].mxu1 %v6544_v41 }
 0x25c   : > { %3216 = vmatpush1.bf16.msra.mxu1 %v5063_v43  ;;  %3247 = vmatprep.mubr.bf16.mxu1 %v6451_v35  ;;  %v5084_v35 = vld [vmem:[%s7021_s4 + $0xe8] ss:$16 sps:$4 sm:$0xff]  }
 0x25d   : > { %3217 = vmatprep.subr.bf16.mxu1 %v5068_v23  ;;  %3727 = vmatpush1.bf16.msra.mxu0 %v5152_v48  ;;  %v5214_v43 = vld [vmem:[%s7023_s30 + $0x18] sm:$0xff]   ;;  %v5216_v23 = vld [vmem:[%s7023_s30 + $0x20] sm:$0xff]   ;;  %v3268_v48 = vsub.s32 2, %v6295_v12 }
 0x25e   : > { %3728 = vmatprep.subr.bf16.mxu0 %v5153_v10  ;;  %v3272_v10 = vsub.s32 3, %v6295_v12 }
 0x260   : > { %3218 = vmatpush1.bf16.msra.mxu1 %v5066_v58  ;;  %v6746_v58 = vld [vmem:[%s7025_s14] sm:$0xf] }
 0x261   : > { %3219 = vmatprep.subr.bf16.mxu1 %v5071_v59  ;;  %3729 = vmatpush1.bf16.msra.mxu0 %v5155_v50  ;;  %v3261_v59 = vrot.slane %v6741_v39, %v6304_v2  ;;  %v3287_v61 = vrot.slane %v6746_v58, %v6304_v2  ;;  %v5198_v50 = vld [vmem:[%s7022_s7 + $0x1d0] ss:$8 sps:$4 sm:$0xff]   ;;  %v3299_v12 = vrot.slane %v6746_v58, %v3272_v10 }
 0x262   : > { %3730 = vmatprep.subr.bf16.mxu0 %v5156_v51  ;;  %v3269_v51 = vrot.slane %v6741_v39, %v3268_v48 }
 0x264   : > { %3220 = vmatpush1.bf16.msra.mxu1 %v5069_v24 }
 0x265   : > { %3221 = vmatprep.subr.bf16.mxu1 %v5074_v37  ;;  %3731 = vmatpush1.bf16.msra.mxu0 %v5158_v53  ;;  %v3291_v37 = vrot.slane %v6746_v58, %v6312_v32  ;;  %v5203_v53 = vld [vmem:[%s7022_s7 + $0x1e4] ss:$8 sps:$4 sm:$0xff]  }
 0x266   : > { %3741 = vmatprep.subr.bf16.mxu0 %v5161_v55  ;;  %v3273_v55 = vrot.slane %v6741_v39, %v3272_v10  ;;  %v5204_v39 = vld [vmem:[%s7022_s7 + $0x1f0] ss:$8 sps:$4 sm:$0xff]  }
 0x268   : > { %3222 = vmatpush1.bf16.msra.mxu1 %v5072_v3 }
 0x269   : > { %3223 = vmatprep.subr.bf16.mxu1 %v5077_v5 }
 0x26c   : > { %3224 = vmatpush1.bf16.msra.mxu1 %v5075_v8 }
 0x26d   : > { %3225 = vmatprep.subr.bf16.mxu1 %v5080_v11 }
 0x270   : > { %3226 = vmatpush1.bf16.msra.mxu1 %v5078_v14 }
 0x271   : > { %3227 = vmatprep.subr.bf16.mxu1 %v5083_v16  ;;  %v5159_v16 = vld [vmem:[%s7022_s7 + $0x100] ss:$8 sps:$4 sm:$0xff]  }
 0x274   : > { %3228 = vmatpush1.bf16.msra.mxu1 %v5081_v29  ;;  %v5167_v29 = vld [vmem:[%s7022_s7 + $0x124] ss:$8 sps:$4 sm:$0xff]  }
 0x275   : > { %3229 = vmatprep.subr.bf16.mxu1 %v5086_v34  ;;  %v5165_v34 = vld [vmem:[%s7022_s7 + $0x120] ss:$8 sps:$4 sm:$0xff]  }
 0x278   : > { %3230 = vmatpush1.bf16.msra.mxu1 %v5084_v35  ;;  %v5173_v35 = vld [vmem:[%s7022_s7 + $0x144] ss:$8 sps:$4 sm:$0xff]  }
 0x279   : > { %3231 = vmatprep.subr.bf16.mxu1 %v5089_v15  ;;  %v5171_v15 = vld [vmem:[%s7022_s7 + $0x140] ss:$8 sps:$4 sm:$0xff]  }
 0x27c   : > { %3232 = vmatpush1.bf16.msra.mxu1 %v5087_v19  ;;  %v5179_v19 = vld [vmem:[%s7022_s7 + $0x164] ss:$8 sps:$4 sm:$0xff]  }
 0x27d   : > { %3233 = vmatprep.subr.bf16.mxu1 %v5092_v21  ;;  %v5177_v21 = vld [vmem:[%s7022_s7 + $0x160] ss:$8 sps:$4 sm:$0xff]  }
 0x280   : > { %3234 = vmatpush1.bf16.msra.mxu1 %v5090_v22  ;;  %v5182_v22 = vld [vmem:[%s7022_s7 + $0x174] ss:$8 sps:$4 sm:$0xff]  }
 0x281   : > { %3235 = vmatprep.subr.bf16.mxu1 %v5095_v60  ;;  %v5180_v60 = vld [vmem:[%s7022_s7 + $0x170] ss:$8 sps:$4 sm:$0xff]  }
 0x284   : > { %3236 = vmatpush1.bf16.msra.mxu1 %v5093_v56  ;;  %v5185_v56 = vld [vmem:[%s7022_s7 + $0x184] ss:$8 sps:$4 sm:$0xff]  }
 0x285   : > { %3237 = vmatprep.subr.bf16.mxu1 %v5098_v36  ;;  %v5183_v36 = vld [vmem:[%s7022_s7 + $0x180] ss:$8 sps:$4 sm:$0xff]  }
 0x288   : > { %3238 = vmatpush1.bf16.msra.mxu1 %v5096_v9  ;;  %v5188_v9 = vld [vmem:[%s7022_s7 + $0x194] ss:$8 sps:$4 sm:$0xff]  }
 0x289   : > { %3239 = vmatprep.subr.bf16.mxu1 %v5101_v0  ;;  %v5186_v0 = vld [vmem:[%s7022_s7 + $0x190] ss:$8 sps:$4 sm:$0xff]  }
 0x28c   : > { %3240 = vmatpush1.bf16.msra.mxu1 %v5099_v54  ;;  %v5191_v54 = vld [vmem:[%s7022_s7 + $0x1a4] ss:$8 sps:$4 sm:$0xff]  }
 0x28d   : > { %3241 = vmatprep.subr.bf16.mxu1 %v5104_v45  ;;  %v5189_v45 = vld [vmem:[%s7022_s7 + $0x1a0] ss:$8 sps:$4 sm:$0xff]  }
 0x290   : > { %3242 = vmatpush1.bf16.msra.mxu1 %v5102_v44  ;;  %v5194_v44 = vld [vmem:[%s7022_s7 + $0x1b4] ss:$8 sps:$4 sm:$0xff]  }
 0x291   : > { %3243 = vmatprep.subr.bf16.mxu1 %v5107_v27  ;;  %v5192_v27 = vld [vmem:[%s7022_s7 + $0x1b0] ss:$8 sps:$4 sm:$0xff]  }
 0x294   : > { %3244 = vmatpush1.bf16.msra.mxu1 %v5105_v33  ;;  %v5197_v33 = vld [vmem:[%s7022_s7 + $0x1c4] ss:$8 sps:$4 sm:$0xff]  }
 0x295   : > { %3245 = vmatprep.subr.bf16.mxu1 %v5110_v46  ;;  %v5195_v46 = vld [vmem:[%s7022_s7 + $0x1c0] ss:$8 sps:$4 sm:$0xff]  }
 0x298   : > { %3246 = vmatpush1.bf16.msra.mxu1 %v5108_v47  ;;  %v5200_v47 = vld [vmem:[%s7022_s7 + $0x1d4] ss:$8 sps:$4 sm:$0xff]  }
 0x299   : > { %4535 = vmatprep.subr.bf16.mxu1 %v5207_v31  ;;  %v3295_v31 = vrot.slane %v6746_v58, %v3268_v48 }
 0x29b   : > { %3248 = vmatmul.mubr.bf16.vlgmr.msra.gmra.mrb[4].mxu1 %v6544_v41  ;;  %v5215_v41 = vld [vmem:[%s7023_s30 + $0x60] sm:$0xff]  }
 0x29c   : > { %4536 = vmatpush3.bf16.msra.mxu1 %v5208_v1 }
 0x29d   : > { %4537 = vmatprep.subr.bf16.mxu1 %v5209_v4  ;;  %v5201_v4 = vld [vmem:[%s7022_s7 + $0x1e0] ss:$8 sps:$4 sm:$0xff]  }
 0x2a0   : > { %4538 = vmatpush3.bf16.msra.mxu1 %v5210_v49 }
 0x2a1   : > { %4539 = vmatprep.subr.bf16.mxu1 %v5211_v40 }
 0x2a4   : > { %4540 = vmatpush3.bf16.msra.mxu1 %v5212_v57  ;;  %v5206_v57 = vld [vmem:[%s7022_s7 + $0x1f4] ss:$8 sps:$4 sm:$0xff]  }
 0x2a5   : > { %4541 = vmatprep.subr.bf16.mxu1 %v5213_v20 }
 0x2a8   : > { %4542 = vmatpush3.bf16.msra.mxu1 %v5214_v43 }
 0x2a9   : > { %4543 = vmatprep.subr.bf16.mxu1 %v5215_v41 }
 0x2ac   : > { %4544 = vmatpush3.bf16.msra.mxu1 %v5216_v23 }
 0x2ad   : > { %4545 = vmatprep.subr.bf16.mxu1 %v5217_v38 }
 0x32e   : > { %v3208_v24 = vpop.f32.mrb[0].mxu1 }
 0x32f   : > { %v3278_v17 = vmul.f32 %v3261_v59, %v3208_v24  ;;  %v3210_v63 = vpop.f32.mrb[1].mxu1  ;;  %v5218_v24 = vld [vmem:[%s7023_s30 + $0x28] sm:$0xff]  }
 0x330   : > { %v3279_v3 = vmul.f32 %v3265_v6, %v3210_v63  ;;  %v3212_v5 = vpop.f32.mrb[2].mxu1  ;;  %4546 = vmatpush3.bf16.msra.mxu1 %v5218_v24  ;;  %v5221_v63 = vld [vmem:[%s7023_s30 + $0x78] sm:$0xff]  }
 0x331   : > { %v3304_v30 = vadd.f32 %v3287_v61, %v3278_v17  ;;  %v3213_v7 = vpop.f32.mrb[3].mxu1  ;;  %v5220_v17 = vld [vmem:[%s7023_s30 + $0x30] sm:$0xff]   ;;  %v3782_v5 = vld [vmem:[%s7026_s28] sm:$0x3] }
 0x332   : > { %v3305_v8 = vadd.f32 %v3291_v37, %v3279_v3  ;;  %v5219_v37 = vld [vmem:[%s7023_s30 + $0x70] sm:$0xff]   ;;  %v5222_v3 = vld [vmem:[%s7023_s30 + $0x38] sm:$0xff]   ;;  %v3787_v7 = vrot.slane %v3782_v5, %v6304_v2 }
 0x333   : > { %v3308_v11 = vmax.f32 %v3304_v30, 0.0  ;;  %4547 = vmatprep.subr.bf16.mxu1 %v5219_v37  ;;  %v3796_v30 = vld [vmem:[%s7027_s5] sm:$0x3] }
 0x334   : > { %v3309_v52 = vmax.f32 %v3305_v8, 0.0  ;;  %4548 = vmatpush3.bf16.msra.mxu1 %v5220_v17  ;;  %v3791_v8 = vrot.slane %v3782_v5, %v6312_v32 }
 0x335   : > { %v3312_v13 = vpack.c.bf16 %v3308_v11, %v3308_v11  ;;  %4549 = vmatprep.subr.bf16.mxu1 %v5221_v63  ;;  %v3801_v11 = vrot.slane %v3796_v30, %v6304_v2  ;;  %v3847_v2 = vstv %s3846_s6 }
 0x336   : > { %v3313_v14 = vpack.c.bf16 %v3309_v52, %v3309_v52 }
 0x338   : > { %3732 = vmatprep.mubr.bf16.mxu0 %v3313_v14  ;;  %4550 = vmatpush3.bf16.msra.mxu1 %v5222_v3 }
 0x339   : > { %3733 = vmatmul.mubr.bf16.vlgmr.msra.gmra.mrb[0].mxu0 %v3312_v13  ;;  %v3805_v13 = vrot.slane %v3796_v30, %v6312_v32 }
 0x33a   : > { %3742 = vmatpush1.bf16.msra.mxu0 %v5159_v16 }
 0x33b   : > { %3743 = vmatprep.subr.bf16.mxu0 %v5164_v62 }
 0x33e   : > { %3744 = vmatpush1.bf16.msra.mxu0 %v5162_v28 }
 0x33f   : > { %3745 = vmatprep.subr.bf16.mxu0 %v5167_v29 }
 0x342   : > { %3746 = vmatpush1.bf16.msra.mxu0 %v5165_v34 }
 0x343   : > { %3747 = vmatprep.subr.bf16.mxu0 %v5170_v18 }
 0x346   : > { %3748 = vmatpush1.bf16.msra.mxu0 %v5168_v42 }
 0x347   : > { %3749 = vmatprep.subr.bf16.mxu0 %v5173_v35 }
 0x34a   : > { %3750 = vmatpush1.bf16.msra.mxu0 %v5171_v15 }
 0x34b   : > { %3751 = vmatprep.subr.bf16.mxu0 %v5176_v25 }
 0x34e   : > { %3752 = vmatpush1.bf16.msra.mxu0 %v5174_v26 }
 0x34f   : > { %3753 = vmatprep.subr.bf16.mxu0 %v5179_v19 }
 0x352   : > { %3754 = vmatpush1.bf16.msra.mxu0 %v5177_v21 }
 0x353   : > { %3755 = vmatprep.subr.bf16.mxu0 %v5182_v22 }
 0x356   : > { %3756 = vmatpush1.bf16.msra.mxu0 %v5180_v60 }
 0x357   : > { %3757 = vmatprep.subr.bf16.mxu0 %v5185_v56 }
 0x35a   : > { %3758 = vmatpush1.bf16.msra.mxu0 %v5183_v36 }
 0x35b   : > { %3759 = vmatprep.subr.bf16.mxu0 %v5188_v9 }
 0x35e   : > { %3760 = vmatpush1.bf16.msra.mxu0 %v5186_v0 }
 0x35f   : > { %3761 = vmatprep.subr.bf16.mxu0 %v5191_v54 }
 0x362   : > { %3762 = vmatpush1.bf16.msra.mxu0 %v5189_v45 }
 0x363   : > { %3763 = vmatprep.subr.bf16.mxu0 %v5194_v44 }
 0x366   : > { %3764 = vmatpush1.bf16.msra.mxu0 %v5192_v27 }
 0x367   : > { %3765 = vmatprep.subr.bf16.mxu0 %v5197_v33 }
 0x36a   : > { %3766 = vmatpush1.bf16.msra.mxu0 %v5195_v46 }
 0x36b   : > { %3767 = vmatprep.subr.bf16.mxu0 %v5200_v47 }
 0x36e   : > { %v3249_v1 = vpop.f32.mrb[4].mxu1  ;;  %3768 = vmatpush1.bf16.msra.mxu0 %v5198_v50 }
 0x36f   : > { %v3280_v49 = vmul.f32 %v3269_v51, %v3249_v1  ;;  %v3251_v40 = vpop.f32.mrb[5].mxu1  ;;  %3769 = vmatprep.subr.bf16.mxu0 %v5203_v53 }
 0x370   : > { %v3281_v20 = vmul.f32 %v3273_v55, %v3251_v40  ;;  %v3253_v43 = vpop.f32.mrb[6].mxu1 }
 0x371   : > { %v3306_v41 = vadd.f32 %v3295_v31, %v3280_v49  ;;  %v3254_v23 = vpop.f32.mrb[7].mxu1 }
 0x372   : > { %v3307_v38 = vadd.f32 %v3299_v12, %v3281_v20  ;;  %3770 = vmatpush1.bf16.msra.mxu0 %v5201_v4 }
 0x373   : > { %v3310_v58 = vmax.f32 %v3306_v41, 0.0  ;;  %3771 = vmatprep.subr.bf16.mxu0 %v5206_v57 }
 0x374   : > { %v3311_v59 = vmax.f32 %v3307_v38, 0.0 }
 0x375   : > { %v3314_v61 = vpack.c.bf16 %v3310_v58, %v3310_v58 }
 0x376   : > { %v3315_v6 = vpack.c.bf16 %v3311_v59, %v3311_v59  ;;  %3772 = vmatpush1.bf16.msra.mxu0 %v5204_v39 }
 0x378   : > { %3773 = vmatprep.mubr.bf16.mxu0 %v3315_v6 }
 0x379   : > { %3774 = vmatmul.mubr.bf16.vlgmr.msra.gmra.mrb[0].mxu0 %v3314_v61 }
 0x44c   : > { %v3775_v52 = vpop.f32.mrb[0].mxu0 }
 0x44d   : > { %v3794_v14 = vmul.f32 %v3787_v7, %v3775_v52  ;;  %v3777_v16 = vpop.f32.mrb[1].mxu0 }
 0x44e   : > { %v3795_v62 = vmul.f32 %v3791_v8, %v3777_v16  ;;  %v3779_v28 = vpop.f32.mrb[2].mxu0 }
 0x44f   : > { %v3808_v29 = vadd.f32 %v3801_v11, %v3794_v14  ;;  %v3780_v34 = vpop.f32.mrb[3].mxu0 }
 0x450   : > { %v3809_v18 = vadd.f32 %v3805_v13, %v3795_v62 }
 0x451   : > { %v3810_v42 = vmax.f32 %v3808_v29, 0.0 }
 0x452   : > { %v3811_v35 = vmax.f32 %v3809_v18, 0.0 }
 0x453   : > { %v3812_v25 = vpack.c.bf16 %v3810_v42, %v3810_v42 }
 0x454   : > { %v3813_v15 = vpack.c.bf16 %v3811_v35, %v3811_v35 }
 0x456   : > { %3976 = vmatprep.mubr.bf16.mxu1 %v3813_v15 }
 0x457   : > { %3977 = vmatmul.mubr.bf16.vlgmr.msra.gmra.mrb[8].mxu1 %v3812_v25 }
 0x52a   : > { %v4551_v26 = vpop.f32.mrb[8].mxu1 }
 0x52b   : > { %v4552_v19 = vpop.f32.mrb[9].mxu1 }
 0x52c   : > { %v4553_v21 = vadd.f32 %v4552_v19, %v4551_v26  ;;  %v4554_v32 = vpop.f32.mrb[10].mxu1 }
 0x52d   : > { %v4555_v22 = vpop.f32.mrb[11].mxu1 }
 0x52e   : > { %v3979_v60 = vadd.f32 %v4553_v21, %v3847_v2 }
 0x530   : > { %v4530_v56 = vmul.f32 -1.442695, %v3979_v60 }
 0x532   : > { %5223 = vpow2.f32 %v4530_v56 }
 0x53c   : > { %v5224_v36 = vpop.eup %5223 }
 0x53d   : > { %v3987_v9 = vadd.f32 1.0, %v5224_v36 }
 0x53f   : > { %5225 = vrcp.f32 %v3987_v9 }
 0x549   : > { %v5226_v0 = vpop.eup %5225 }
 0x54a   : > { %3990 = vst [vmem:[%s7028_s10] sm:$0xff] %v5226_v0 }
 0x54b PF: > { %s7029_s18 = sld [smem:[#allocation11_spill]]  ;;  %s7030_s11 = sld [smem:[#allocation30_spill]] }
 0x54c   : > { %s7031_s29 = scalar_lea.vmem [#allocation7], %s5628_s9  ;;  %s7032_s5 = sand.u32 1, %s5321_s16  }
 0x54d   : > { %s4005_s14 = sshll.u32 %s7031_s29, 4  ;;  %s3992_s6 = scalar_lea.sflag [#allocation8], %s7032_s5  ;;  %s4006_s14 = int_to_ptr.vmem [resolvable:$true] %s4005_s14 }
 0x54e   : > { %s5227_s0 = scalar_lea.vmem %s4006_s14, 128  ;;  %s5373_s10 = smov [#allocation7]  }
 0x54f   : > { %p5228_p11 = scmp.ne.s32.totalorder %s4006_s14, %s5227_s0  ;;  %s5231_s1 = sshll.u32 %s5373_s10, 4  ;;  %s5232_s1 = int_to_ptr.vmem [resolvable:$false] %s5231_s1 }
 0x550   : > { %s5233_s2 = scalar_lea.vmem %s5232_s1, 256  ;;  %p5234_p0 = scmp.lt.s32.totalorder %s4006_s14, %s5232_s1 }
 0x551   : > { %s4532_s20 = sshll.u32 %s7029_s18, 7  ;;  %p5229_p12 = pnand %p5228_p11, %p5587_p5 }
 0x552   : > { %s6886_s28 = scalar_lea.hbm %s7030_s11, %s4532_s20  ;;  %p5235_p1 = scmp.lt.s32.totalorder %s5233_s2, %s5227_s0 }
 0x553   : > { %p5230_p13 = pneg %p5229_p12 }
 0x554   : > { %p5236_p4 = por %p5235_p1, %p5234_p0 }
 0x556   : > { %p5237_p2 = pnand %p5236_p4, %p5230_p13 }
 0x558   : > { %5240 = shalt.err (!%p5237_p2)
}
 0x559   : > { %s5241_s9 = scalar_lea.hbm %s6886_s28, 128  ;;  %s5245_s24 = scalar_lea.hbm %s7030_s11, 256 }
 0x55a   : > { %p5242_p3 = scmp.ne.s32.totalorder %s6886_s28, %s5241_s9  ;;  %p5246_p9 = scmp.lt.u32.totalorder %s6886_s28, %s7030_s11 }
 0x55b   : > { %p5247_p10 = scmp.lt.u32.totalorder %s5245_s24, %s5241_s9  ;;  %p5249_p12 = scmp.lt.u32.totalorder %s5241_s9, %s6886_s28 }
 0x55c   : > { %p5243_p7 = pnand %p5242_p3, %p5587_p5 }
 0x55d   : > { %p5248_p11 = por %p5247_p10, %p5246_p9 }
 0x55e   : > { %p5244_p8 = pneg %p5243_p7 }
 0x55f   : > { %p5250_p13 = por %p5249_p12, %p5248_p11 }
 0x561   : > { %p5251_p0 = pnand %p5250_p13, %p5244_p8 }
 0x563   : > { %5254 = shalt.err (!%p5251_p0)
}
 0x564   : > { %4642 = dma.vmem_to_hbm [thread:$0]  (%p5587_p5), %s4006_s14, 128, %s6886_s28, %s3992_s6  }
 0x565 PF: > { %p4648_p1 = scmp.ge.s32.totalorder %s5369_s27, 2  ;;  %s4017_s0 = sand.u32 1, %s5317_s15  }
 0x566   : > { %s4018_s2 = scalar_lea.sflag [#allocation8], %s4017_s0 }
 0x567   : > { %p4645_p4 = pnand %p4648_p1, %p5591_p6 }
 0x569   : > { %5312 = dma.done.wait (!%p4645_p4), %s4018_s2, 128  }
 0x56a   : > { %5314 = vsyncadd (!%p4645_p4), %s4018_s2, 4294967168  ;;  %s28_s27 = sadd.s32 1, %s5369_s27   ;;  %s7034_s12 = sld [smem:[#allocation16_spill]] }
 0x56b   : > { %p6914_p2 = scmp.ge.s32.totalorder %s28_s27, 18   ;;  %s7035_s28 = sld [smem:[#allocation15_spill]] }
 0x56c   : > { %s7036_s14 = sld [smem:[#allocation14_spill]]  ;;  %s7037_s3 = sld [smem:[#allocation12_spill]] }
 0x56d   : > { %s7038_s5 = sld [smem:[#allocation13_spill]]  ;;  %s7039_s15 = smov %s5321_s16 }
 0x56e   : > { %s7040_s16 = smov %s5325_s17  ;;  %s7041_s17 = smov %s5579_s13 }
 0x56f   : > { %s7042_s18 = smov %s5333_s19  ;;  %s7044_s20 = smov %s5341_s21 }
 0x570   : > { %s7043_s19 = smov %s7034_s12  ;;  %s7046_s22 = smov %s5349_s23 }
 0x571   : > { %s7045_s21 = smov %s7035_s28  ;;  %s7048_s13 = smov %s5361_s25 }
 0x572   : > { %s7047_s23 = smov %s7036_s14  ;;  %s7049_s24 = smov %s5365_s26 }
 0x573   : > { %s7050_s25 = smov %s7037_s3  ;;  %s7051_s26 = smov %s7038_s5 }
 0x574   :  { %27 = sbr.rel (!%p6914_p2) target bundleno = 24 (0x18), region = 263 }
 0x57b   :  { %4023 = vsyncpa [#allocation8], 1 }
 0x57c   :  { %4025 = vsyncpa [#allocation8 + $0x1], 1 }

</bundles_post_ra>
